<compile_context>
chip_gen: v7x
topology: tpu7x:2x2x1
jax: 0.10.0
libtpu: 0.0.40
codegen_flags: <defaults>
</compile_context>

<pallas_src>
from functools import partial

import jax
import jax.numpy as jnp
from jax.experimental import pallas as pl
from jax.experimental.pallas import tpu as pltpu

EPS = float(jnp.finfo(jnp.float32).eps)   # torch F.rms_norm(eps=None) on float32
NEG_BIG = -1e30                           # finite causal mask (no -inf hazards)
VMEM_LIMIT = 32 * 1024 * 1024             # safe default on v5e / v6e / v7x


def _pick_tile(n, candidates=(512, 256, 128, 64, 32, 16, 8)):
    for c in candidates:
        if n % c == 0:
            return c
    return n


# ---------------------------------------------------------------------------
# Tiled linear kernel: out[tm, tn] = x[tm, K] @ w[K, tn]   (bf16 MXU, f32 acc)
# ---------------------------------------------------------------------------
def _matmul_kernel(x_ref, w_ref, o_ref):
    o_ref[...] = jnp.dot(x_ref[...].astype(jnp.bfloat16),
                         w_ref[...].astype(jnp.bfloat16),
                         preferred_element_type=jnp.float32).astype(o_ref.dtype)


# TODO(synk): tile K with an "arbitrary" reduction axis + VMEM accumulator if
# n_embd ever grows past what a single (tm, K) x (K, tn) pair fits in VMEM.
def _linear(x, w_t, out_dtype=jnp.float32):
    """x: (M, K), w_t: (K, N) weight already transposed to (in, out), bf16."""
    M, K = x.shape
    K2, N = w_t.shape
    assert K == K2
    tm = _pick_tile(M)
    tn = _pick_tile(N)
    grid = (M // tm, N // tn)
    return pl.pallas_call(
        _matmul_kernel,
        out_shape=jax.ShapeDtypeStruct((M, N), out_dtype),
        grid=grid,
        in_specs=[pl.BlockSpec((tm, K), lambda i, j: (i, 0)),
                  pl.BlockSpec((K, tn), lambda i, j: (0, j))],
        out_specs=pl.BlockSpec((tm, tn), lambda i, j: (i, j)),
        compiler_params=pltpu.CompilerParams(
            dimension_semantics=("parallel", "parallel"),
            vmem_limit_bytes=VMEM_LIMIT),
    )(x, w_t)


# ---------------------------------------------------------------------------
# Per-(batch, head, q-tile) attention kernel: rms_norm + RoPE + causal softmax
# ---------------------------------------------------------------------------
def _attn_kernel(q_ref, k_ref, v_ref, cos_ref, sin_ref, o_ref, *,
                 tq, scale, eps):
    T, Dh = k_ref.shape
    half = Dh // 2
    qi = pl.program_id(2)
    row0 = pl.multiple_of(qi * tq, tq)

    def rmsnorm(t):
        return t * jax.lax.rsqrt(jnp.mean(t * t, axis=-1, keepdims=True) + eps)

    def rope(t, c, s):
        # y = t * [cos, cos] + swap_halves(t) * [sin, -sin]
        if Dh % 128 == 0:
            tr = pltpu.roll(t, shift=half, axis=t.ndim - 1)   # XLU: [t2, t1]
        else:
            tr = jnp.concatenate([t[:, half:], t[:, :half]], axis=-1)
        return t * c + tr * s

    cos = cos_ref[...]                       # (T, Dh)  bf16-rounded, f32
    sin = sin_ref[...]
    cos_q = cos_ref[pl.ds(row0, tq), :]      # rows of this q tile
    sin_q = sin_ref[pl.ds(row0, tq), :]

    qh = rope(rmsnorm(q_ref[...]), cos_q, sin_q).astype(jnp.bfloat16)  # (tq, Dh)
    kh = rope(rmsnorm(k_ref[...]), cos, sin).astype(jnp.bfloat16)      # (T, Dh)

    # scores: (tq, T) f32 on the MXU
    s = jax.lax.dot_general(qh, kh, (((1,), (1,)), ((), ())),
                            preferred_element_type=jnp.float32) * scale
    rows = row0 + jax.lax.broadcasted_iota(jnp.int32, (tq, T), 0)
    cols = jax.lax.broadcasted_iota(jnp.int32, (tq, T), 1)
    s = jnp.where(rows >= cols, s, NEG_BIG)

    m = jnp.max(s, axis=-1, keepdims=True)
    p = jnp.exp(s - m)
    l = jnp.sum(p, axis=-1, keepdims=True)
    acc = jnp.dot(p.astype(jnp.bfloat16), v_ref[...],
                  preferred_element_type=jnp.float32)                  # (tq, Dh)
    o_ref[...] = (acc * pl.reciprocal(l, approx=True)).astype(o_ref.dtype)


# TODO(synk): for very long T, replace the full (tq, T) score block with an
# online-softmax (flash) KV-tiled accumulator in VMEM scratch.
def _attention(q, k, v_bf16, cos_f, sin_f, *, scale):
    B, H, T, Dh = q.shape
    tq = 128 if (T % 128 == 0) else T
    grid = (B, H, T // tq)
    q_spec = pl.BlockSpec((None, None, tq, Dh), lambda b, h, i: (b, h, i, 0))
    kv_spec = pl.BlockSpec((None, None, T, Dh), lambda b, h, i: (b, h, 0, 0))
    tab_spec = pl.BlockSpec((T, Dh), lambda b, h, i: (0, 0))
    return pl.pallas_call(
        partial(_attn_kernel, tq=tq, scale=scale, eps=EPS),
        out_shape=jax.ShapeDtypeStruct((B, H, T, Dh), jnp.bfloat16),
        grid=grid,
        in_specs=[q_spec, kv_spec, kv_spec, tab_spec, tab_spec],
        out_specs=q_spec,
        compiler_params=pltpu.CompilerParams(
            dimension_semantics=("parallel", "parallel", "parallel"),
            vmem_limit_bytes=VMEM_LIMIT),
    )(q, k, v_bf16, cos_f, sin_f)


# ---------------------------------------------------------------------------
# Rotary tables (full head width, duplicated cos / sign-patterned sin)
# ---------------------------------------------------------------------------
def rotary_tables(T, head_dim, base=10000.0):
    inv_freq = 1.0 / (base ** (jnp.arange(0, head_dim, 2, dtype=jnp.float32)
                               / head_dim))
    t = jnp.arange(T, dtype=jnp.float32)
    freqs = jnp.outer(t, inv_freq)                      # (T, head_dim // 2)
    # PyTorch's Rotary caches cos/sin in bfloat16; reproduce that rounding.
    cos = jnp.cos(freqs).astype(jnp.bfloat16).astype(jnp.float32)
    sin = jnp.sin(freqs).astype(jnp.bfloat16).astype(jnp.float32)
    cos_full = jnp.concatenate([cos, cos], axis=-1)     # (T, head_dim)
    sin_full = jnp.concatenate([sin, -sin], axis=-1)    # signed for half-swap form
    return cos_full, sin_full


# ---------------------------------------------------------------------------
# Module forward: CausalSelfAttention.forward(x)
# ---------------------------------------------------------------------------
def causal_self_attention(x, wq, wk, wv, wo, *, n_head):
    B, T, C = x.shape
    assert C % n_head == 0
    Dh = C // n_head

    # Pre-transpose PyTorch (out, in) Linear weights to (in, out) once; bf16 DMA.
    w_qkv_t = jnp.concatenate([wq.T, wk.T, wv.T], axis=1).astype(jnp.bfloat16)
    w_o_t = wo.T.astype(jnp.bfloat16)

    # bf16 activations into the projection (same numerics as an in-kernel cast,
    # half the per-output-tile DMA bytes).
    x2 = x.reshape(B * T, C).astype(jnp.bfloat16)
    qkv = _linear(x2, w_qkv_t, out_dtype=jnp.float32)   # (B*T, 3C) f32

    def heads(t):                                       # (B*T, C) -> (B, H, T, Dh)
        return t.reshape(B, T, n_head, Dh).transpose(0, 2, 1, 3)

    q = heads(qkv[:, :C])                               # f32 (rms_norm fidelity)
    k = heads(qkv[:, C:2 * C])
    v = heads(qkv[:, 2 * C:]).astype(jnp.bfloat16)      # bf16 PV operand

    cos_f, sin_f = rotary_tables(T, Dh)
    y = _attention(q, k, v, cos_f, sin_f, scale=1.0 / (Dh ** 0.5))  # (B,H,T,Dh) bf16

    y = y.transpose(0, 2, 1, 3).reshape(B * T, C)
    out = _linear(y, w_o_t, out_dtype=jnp.float32)      # c_proj
    return out.reshape(B, T, C)


# ---------------------------------------------------------------------------
# Pure-JAX f32 reference (mirrors the PyTorch module exactly)
# ---------------------------------------------------------------------------
def _reference(x, wq, wk, wv, wo, *, n_head):
    B, T, C = x.shape
    Dh = C // n_head
    half = Dh // 2
    q = (x @ wq.T).reshape(B, T, n_head, Dh)
    k = (x @ wk.T).reshape(B, T, n_head, Dh)
    v = (x @ wv.T).reshape(B, T, n_head, Dh)

    def rms(t):
        return t * jax.lax.rsqrt(jnp.mean(t * t, axis=-1, keepdims=True) + EPS)

    q, k = rms(q), rms(k)

    inv_freq = 1.0 / (10000.0 ** (jnp.arange(0, Dh, 2, dtype=jnp.float32) / Dh))
    freqs = jnp.outer(jnp.arange(T, dtype=jnp.float32), inv_freq)
    cos = jnp.cos(freqs).astype(jnp.bfloat16).astype(jnp.float32)[None, :, None, :]
    sin = jnp.sin(freqs).astype(jnp.bfloat16).astype(jnp.float32)[None, :, None, :]

    def rope(t):
        t1, t2 = t[..., :half], t[..., half:]
        return jnp.concatenate([t1 * cos + t2 * sin, -t1 * sin + t2 * cos], axis=-1)

    q, k = rope(q), rope(k)
    q, k, v = (a.transpose(0, 2, 1, 3) for a in (q, k, v))
    s = jnp.einsum("bhqd,bhkd->bhqk", q, k) / jnp.sqrt(jnp.float32(Dh))
    mask = jnp.tril(jnp.ones((T, T), dtype=bool))
    s = jnp.where(mask[None, None], s, -jnp.inf)
    p = jax.nn.softmax(s, axis=-1)
    y = jnp.einsum("bhqk,bhkd->bhqd", p, v)
    y = y.transpose(0, 2, 1, 3).reshape(B, T, C)
    return y @ wo.T


if __name__ == "__main__":
    # Small config consistent with the module; head_dim = 128 keeps lanes dense.
    B, T, n_embd, n_head = 2, 32, 256, 2

    key = jax.random.PRNGKey(0)
    kx, kq, kk, kv, ko = jax.random.split(key, 5)
    bound = 1.0 / (n_embd ** 0.5)
    x = jax.random.normal(kx, (B, T, n_embd), jnp.float32)
    wq = jax.random.uniform(kq, (n_embd, n_embd), jnp.float32, -bound, bound)
    wk = jax.random.uniform(kk, (n_embd, n_embd), jnp.float32, -bound, bound)
    wv = jax.random.uniform(kv, (n_embd, n_embd), jnp.float32, -bound, bound)
    wo_zero = jnp.zeros((n_embd, n_embd), jnp.float32)   # module zero-inits c_proj
    wo_rand = jax.random.uniform(ko, (n_embd, n_embd), jnp.float32, -bound, bound)

    fwd = jax.jit(partial(causal_self_attention, n_head=n_head))

    # 1) module-faithful weights (c_proj.weight zeroed in __init__): output == 0.
    out0 = fwd(x, wq, wk, wv, wo_zero)
    jax.block_until_ready(out0)
    assert out0.shape == (B, T, n_embd) and out0.dtype == jnp.float32
    assert float(jnp.max(jnp.abs(out0))) == 0.0

    # 2) non-trivial numeric check of the forward math vs. the f32 reference
    #    (forward semantics are weight-agnostic; a random c_proj exercises it).
    out1 = fwd(x, wq, wk, wv, wo_rand)
    ref1 = _reference(x, wq, wk, wv, wo_rand, n_head=n_head)
    jax.block_until_ready(out1)
    max_err = float(jnp.max(jnp.abs(out1 - ref1)))
    assert bool(jnp.allclose(out1, ref1, atol=5e-2, rtol=5e-2)), max_err

    print("KERNEL_OK")
</pallas_src>

<mosaic_0001>
module attributes {stable_mosaic.version = 11 : i64} {
  func.func @_matmul_kernel(%arg0: i32, %arg1: i32, %arg2: memref<64x256xbf16, #tpu.memory_space<vmem>>, %arg3: memref<256x256xbf16, #tpu.memory_space<vmem>>, %arg4: memref<64x256xf32, #tpu.memory_space<vmem>>) attributes {dimension_semantics = [#tpu.dimension_semantics<parallel>, #tpu.dimension_semantics<parallel>], iteration_bounds = array<i64: 1, 3>, scalar_prefetch = 0 : i64, scratch_operands = 0 : i64, tpu.core_type = #tpu.core_type<tc>, window_params = [{transform_indices = @transform_0, window_bounds = array<i64: 64, 256>}, {transform_indices = @transform_1, window_bounds = array<i64: 256, 256>}, {transform_indices = @transform_2, window_bounds = array<i64: 64, 256>}]} {
    %c0 = arith.constant 0 : index
    %c0_0 = arith.constant 0 : index
    %0 = vector.load %arg2[%c0, %c0_0] : memref<64x256xbf16, #tpu.memory_space<vmem>>, vector<64x256xbf16>
    %c0_1 = arith.constant 0 : index
    %c0_2 = arith.constant 0 : index
    %1 = vector.load %arg3[%c0_1, %c0_2] : memref<256x256xbf16, #tpu.memory_space<vmem>>, vector<256x256xbf16>
    %cst = arith.constant dense<0.000000e+00> : vector<64x256xf32>
    %2 = tpu.matmul %0, %1, %cst {dimension_numbers = #tpu.dot_dimension_numbers<[1], [0], [0], [1], [0, 0, 1, 1], [], []>} : vector<64x256xbf16>, vector<256x256xbf16>, vector<64x256xf32> -> vector<64x256xf32>
    %c0_3 = arith.constant 0 : index
    %c0_4 = arith.constant 0 : index
    %3 = vector.load %arg4[%c0_3, %c0_4] : memref<64x256xf32, #tpu.memory_space<vmem>>, vector<64x256xf32>
    tpu.vector_store %arg4[%c0_3, %c0_4], %2 {strides = array<i32>} : memref<64x256xf32, #tpu.memory_space<vmem>>, vector<64x256xf32>,
    return
  }
  func.func @transform_0(%arg0: i32, %arg1: i32) -> (i32, i32) {
    %c0_i32 = arith.constant 0 : i32
    %c0_i32_0 = arith.constant 0 : i32
    return %arg0, %c0_i32 : i32, i32
  }
  func.func @transform_1(%arg0: i32, %arg1: i32) -> (i32, i32) {
    %c0_i32 = arith.constant 0 : i32
    %c0_i32_0 = arith.constant 0 : i32
    return %c0_i32, %arg1 : i32, i32
  }
  func.func @transform_2(%arg0: i32, %arg1: i32) -> (i32, i32) {
    %c0_i32 = arith.constant 0 : i32
    return %arg0, %arg1 : i32, i32
  }
}

module attributes {stable_mosaic.version = 11 : i64} {
  func.func @_attn_kernel(%arg0: i32, %arg1: i32, %arg2: i32, %arg3: memref<1x1x32x128xf32, #tpu.memory_space<vmem>>, %arg4: memref<1x1x32x128xf32, #tpu.memory_space<vmem>>, %arg5: memref<1x1x32x128xbf16, #tpu.memory_space<vmem>>, %arg6: memref<32x128xf32, #tpu.memory_space<vmem>>, %arg7: memref<32x128xf32, #tpu.memory_space<vmem>>, %arg8: memref<1x1x32x128xbf16, #tpu.memory_space<vmem>>) attributes {dimension_semantics = [#tpu.dimension_semantics<parallel>, #tpu.dimension_semantics<parallel>, #tpu.dimension_semantics<parallel>], iteration_bounds = array<i64: 2, 2, 1>, scalar_prefetch = 0 : i64, scratch_operands = 0 : i64, tpu.core_type = #tpu.core_type<tc>, window_params = [{transform_indices = @transform_0, window_bounds = array<i64: 1, 1, 32, 128>}, {transform_indices = @transform_1, window_bounds = array<i64: 1, 1, 32, 128>}, {transform_indices = @transform_2, window_bounds = array<i64: 1, 1, 32, 128>}, {pipeline_mode = #tpu.pipeline_mode<synchronous>, transform_indices = @transform_3, window_bounds = array<i64: 32, 128>}, {pipeline_mode = #tpu.pipeline_mode<synchronous>, transform_indices = @transform_4, window_bounds = array<i64: 32, 128>}, {transform_indices = @transform_5, window_bounds = array<i64: 1, 1, 32, 128>}]} {
    %c32_i32 = arith.constant 32 : i32
    %0 = arith.muli %arg2, %c32_i32 : i32
    %1 = tpu.assume_multiple %0, 32 : i32
    %c0 = arith.constant 0 : index
    %c0_0 = arith.constant 0 : index
    %2 = vector.load %arg6[%c0, %c0_0] : memref<32x128xf32, #tpu.memory_space<vmem>>, vector<32x128xf32>
    %c0_1 = arith.constant 0 : index
    %c0_2 = arith.constant 0 : index
    %3 = vector.load %arg7[%c0_1, %c0_2] : memref<32x128xf32, #tpu.memory_space<vmem>>, vector<32x128xf32>
    %4 = arith.index_cast %1 : i32 to index
    %c0_3 = arith.constant 0 : index
    %5 = vector.load %arg6[%4, %c0_3] : memref<32x128xf32, #tpu.memory_space<vmem>>, vector<32x128xf32>
    %6 = arith.index_cast %1 : i32 to index
    %c0_4 = arith.constant 0 : index
    %7 = vector.load %arg7[%6, %c0_4] : memref<32x128xf32, #tpu.memory_space<vmem>>, vector<32x128xf32>
    %c0_5 = arith.constant 0 : index
    %c0_6 = arith.constant 0 : index
    %c0_7 = arith.constant 0 : index
    %c0_8 = arith.constant 0 : index
    %8 = vector.load %arg3[%c0_5, %c0_6, %c0_7, %c0_8] : memref<1x1x32x128xf32, #tpu.memory_space<vmem>>, vector<1x1x32x128xf32>
    %9 = vector.shape_cast %8 : vector<1x1x32x128xf32> to vector<32x128xf32>
    %10 = arith.mulf %9, %9 : vector<32x128xf32>
    %cst = arith.constant dense<0.000000e+00> : vector<32xf32>
    %11 = vector.multi_reduction <add>, %10, %cst [1] : vector<32x128xf32> to vector<32xf32>
    %12 = vector.shape_cast %11 : vector<32xf32> to vector<32x1xf32>
    %cst_9 = arith.constant 1.280000e+02 : f32
    %13 = vector.broadcast %cst_9 : f32 to vector<32x1xf32>
    %14 = arith.divf %12, %13 : vector<32x1xf32>
    %cst_10 = arith.constant 1.1920929E-7 : f32
    %15 = vector.broadcast %cst_10 : f32 to vector<32x1xf32>
    %16 = arith.addf %14, %15 : vector<32x1xf32>
    %17 = math.rsqrt %16 : vector<32x1xf32>
    %18 = vector.broadcast %17 : vector<32x1xf32> to vector<32x128xf32>
    %19 = arith.mulf %9, %18 : vector<32x128xf32>
    %c64_i32 = arith.constant 64 : i32
    %20 = tpu.dynamic_rotate %19 by %c64_i32 dim 1 : vector<32x128xf32>, i32 -> vector<32x128xf32>
    %21 = arith.mulf %19, %5 : vector<32x128xf32>
    %22 = arith.mulf %20, %7 : vector<32x128xf32>
    %23 = arith.addf %21, %22 : vector<32x128xf32>
    %24 = arith.truncf %23 : vector<32x128xf32> to vector<32x128xbf16>
    %c0_11 = arith.constant 0 : index
    %c0_12 = arith.constant 0 : index
    %c0_13 = arith.constant 0 : index
    %c0_14 = arith.constant 0 : index
    %25 = vector.load %arg4[%c0_11, %c0_12, %c0_13, %c0_14] : memref<1x1x32x128xf32, #tpu.memory_space<vmem>>, vector<1x1x32x128xf32>
    %26 = vector.shape_cast %25 : vector<1x1x32x128xf32> to vector<32x128xf32>
    %27 = arith.mulf %26, %26 : vector<32x128xf32>
    %cst_15 = arith.constant dense<0.000000e+00> : vector<32xf32>
    %28 = vector.multi_reduction <add>, %27, %cst_15 [1] : vector<32x128xf32> to vector<32xf32>
    %29 = vector.shape_cast %28 : vector<32xf32> to vector<32x1xf32>
    %cst_16 = arith.constant 1.280000e+02 : f32
    %30 = vector.broadcast %cst_16 : f32 to vector<32x1xf32>
    %31 = arith.divf %29, %30 : vector<32x1xf32>
    %cst_17 = arith.constant 1.1920929E-7 : f32
    %32 = vector.broadcast %cst_17 : f32 to vector<32x1xf32>
    %33 = arith.addf %31, %32 : vector<32x1xf32>
    %34 = math.rsqrt %33 : vector<32x1xf32>
    %35 = vector.broadcast %34 : vector<32x1xf32> to vector<32x128xf32>
    %36 = arith.mulf %26, %35 : vector<32x128xf32>
    %c64_i32_18 = arith.constant 64 : i32
    %37 = tpu.dynamic_rotate %36 by %c64_i32_18 dim 1 : vector<32x128xf32>, i32 -> vector<32x128xf32>
    %38 = arith.mulf %36, %2 : vector<32x128xf32>
    %39 = arith.mulf %37, %3 : vector<32x128xf32>
    %40 = arith.addf %38, %39 : vector<32x128xf32>
    %41 = arith.truncf %40 : vector<32x128xf32> to vector<32x128xbf16>
    %cst_19 = arith.constant dense<0.000000e+00> : vector<32x32xf32>
    %42 = tpu.matmul %24, %41, %cst_19 {dimension_numbers = #tpu.dot_dimension_numbers<[1], [1], [0], [0], [0, 0, 1, 0], [], []>} : vector<32x128xbf16>, vector<32x128xbf16>, vector<32x32xf32> -> vector<32x32xf32>
    %cst_20 = arith.constant 0.0883883461 : f32
    %43 = vector.broadcast %cst_20 : f32 to vector<32x32xf32>
    %44 = arith.mulf %42, %43 : vector<32x32xf32>
    %45 = tpu.iota {dimensions = array<i32: 0>} : vector<32x32xi32>
    %46 = vector.broadcast %1 : i32 to vector<32x32xi32>
    %47 = arith.addi %46, %45 : vector<32x32xi32>
    %48 = tpu.iota {dimensions = array<i32: 1>} : vector<32x32xi32>
    %49 = arith.cmpi sge, %47, %48 : vector<32x32xi32>
    %cst_21 = arith.constant -1.000000e+30 : f32
    %50 = vector.broadcast %cst_21 : f32 to vector<32x32xf32>
    %51 = arith.select %49, %44, %50 : vector<32x32xi1>, vector<32x32xf32>
    %cst_22 = arith.constant dense<0xFF800000> : vector<32xf32>
    %52 = vector.multi_reduction <maximumf>, %51, %cst_22 [1] : vector<32x32xf32> to vector<32xf32>
    %53 = vector.shape_cast %52 : vector<32xf32> to vector<32x1xf32>
    %54 = vector.broadcast %53 : vector<32x1xf32> to vector<32x32xf32>
    %55 = arith.subf %51, %54 : vector<32x32xf32>
    %56 = math.exp %55 : vector<32x32xf32>
    %cst_23 = arith.constant dense<0.000000e+00> : vector<32xf32>
    %57 = vector.multi_reduction <add>, %56, %cst_23 [1] : vector<32x32xf32> to vector<32xf32>
    %58 = vector.shape_cast %57 : vector<32xf32> to vector<32x1xf32>
    %59 = arith.truncf %56 : vector<32x32xf32> to vector<32x32xbf16>
    %c0_24 = arith.constant 0 : index
    %c0_25 = arith.constant 0 : index
    %c0_26 = arith.constant 0 : index
    %c0_27 = arith.constant 0 : index
    %60 = vector.load %arg5[%c0_24, %c0_25, %c0_26, %c0_27] : memref<1x1x32x128xbf16, #tpu.memory_space<vmem>>, vector<1x1x32x128xbf16>
    %61 = vector.shape_cast %60 : vector<1x1x32x128xbf16> to vector<32x128xbf16>
    %cst_28 = arith.constant dense<0.000000e+00> : vector<32x128xf32>
    %62 = tpu.matmul %59, %61, %cst_28 {dimension_numbers = #tpu.dot_dimension_numbers<[1], [0], [0], [1], [0, 0, 1, 1], [], []>} : vector<32x32xbf16>, vector<32x128xbf16>, vector<32x128xf32> -> vector<32x128xf32>
    %63 = tpu.reciprocal %58 {approx = true} : vector<32x1xf32> -> vector<32x1xf32>
    %64 = vector.broadcast %63 : vector<32x1xf32> to vector<32x128xf32>
    %65 = arith.mulf %62, %64 : vector<32x128xf32>
    %66 = arith.truncf %65 : vector<32x128xf32> to vector<32x128xbf16>
    %c0_29 = arith.constant 0 : index
    %c0_30 = arith.constant 0 : index
    %c0_31 = arith.constant 0 : index
    %c0_32 = arith.constant 0 : index
    %67 = vector.load %arg8[%c0_29, %c0_30, %c0_31, %c0_32] : memref<1x1x32x128xbf16, #tpu.memory_space<vmem>>, vector<1x1x32x128xbf16>
    %68 = vector.shape_cast %67 : vector<1x1x32x128xbf16> to vector<32x128xbf16>
    %69 = vector.shape_cast %66 : vector<32x128xbf16> to vector<1x1x32x128xbf16>
    tpu.vector_store %arg8[%c0_29, %c0_30, %c0_31, %c0_32], %69 {strides = array<i32>} : memref<1x1x32x128xbf16, #tpu.memory_space<vmem>>, vector<1x1x32x128xbf16>,
    return
  }
  func.func @transform_0(%arg0: i32, %arg1: i32, %arg2: i32) -> (i32, i32, i32, i32) {
    %c0_i32 = arith.constant 0 : i32
    %c0_i32_0 = arith.constant 0 : i32
    return %arg0, %arg1, %arg2, %c0_i32 : i32, i32, i32, i32
  }
  func.func @transform_1(%arg0: i32, %arg1: i32, %arg2: i32) -> (i32, i32, i32, i32) {
    %c0_i32 = arith.constant 0 : i32
    %c0_i32_0 = arith.constant 0 : i32
    %c0_i32_1 = arith.constant 0 : i32
    return %arg0, %arg1, %c0_i32, %c0_i32_0 : i32, i32, i32, i32
  }
  func.func @transform_2(%arg0: i32, %arg1: i32, %arg2: i32) -> (i32, i32, i32, i32) {
    %c0_i32 = arith.constant 0 : i32
    %c0_i32_0 = arith.constant 0 : i32
    %c0_i32_1 = arith.constant 0 : i32
    return %arg0, %arg1, %c0_i32, %c0_i32_0 : i32, i32, i32, i32
  }
  func.func @transform_3(%arg0: i32, %arg1: i32, %arg2: i32) -> (i32, i32) {
    %c0_i32 = arith.constant 0 : i32
    %c0_i32_0 = arith.constant 0 : i32
    %c0_i32_1 = arith.constant 0 : i32
    return %c0_i32, %c0_i32_0 : i32, i32
  }
  func.func @transform_4(%arg0: i32, %arg1: i32, %arg2: i32) -> (i32, i32) {
    %c0_i32 = arith.constant 0 : i32
    %c0_i32_0 = arith.constant 0 : i32
    %c0_i32_1 = arith.constant 0 : i32
    return %c0_i32, %c0_i32_0 : i32, i32
  }
  func.func @transform_5(%arg0: i32, %arg1: i32, %arg2: i32) -> (i32, i32, i32, i32) {
    %c0_i32 = arith.constant 0 : i32
    %c0_i32_0 = arith.constant 0 : i32
    return %arg0, %arg1, %arg2, %c0_i32 : i32, i32, i32, i32
  }
}

module attributes {stable_mosaic.version = 11 : i64} {
  func.func @_matmul_kernel(%arg0: i32, %arg1: i32, %arg2: memref<64x256xbf16, #tpu.memory_space<vmem>>, %arg3: memref<256x256xbf16, #tpu.memory_space<vmem>>, %arg4: memref<64x256xf32, #tpu.memory_space<vmem>>) attributes {dimension_semantics = [#tpu.dimension_semantics<parallel>, #tpu.dimension_semantics<parallel>], iteration_bounds = array<i64: 1, 1>, scalar_prefetch = 0 : i64, scratch_operands = 0 : i64, tpu.core_type = #tpu.core_type<tc>, window_params = [{transform_indices = @transform_0, window_bounds = array<i64: 64, 256>}, {transform_indices = @transform_1, window_bounds = array<i64: 256, 256>}, {transform_indices = @transform_2, window_bounds = array<i64: 64, 256>}]} {
    %c0 = arith.constant 0 : index
    %c0_0 = arith.constant 0 : index
    %0 = vector.load %arg2[%c0, %c0_0] : memref<64x256xbf16, #tpu.memory_space<vmem>>, vector<64x256xbf16>
    %c0_1 = arith.constant 0 : index
    %c0_2 = arith.constant 0 : index
    %1 = vector.load %arg3[%c0_1, %c0_2] : memref<256x256xbf16, #tpu.memory_space<vmem>>, vector<256x256xbf16>
    %cst = arith.constant dense<0.000000e+00> : vector<64x256xf32>
    %2 = tpu.matmul %0, %1, %cst {dimension_numbers = #tpu.dot_dimension_numbers<[1], [0], [0], [1], [0, 0, 1, 1], [], []>} : vector<64x256xbf16>, vector<256x256xbf16>, vector<64x256xf32> -> vector<64x256xf32>
    %c0_3 = arith.constant 0 : index
    %c0_4 = arith.constant 0 : index
    %3 = vector.load %arg4[%c0_3, %c0_4] : memref<64x256xf32, #tpu.memory_space<vmem>>, vector<64x256xf32>
    tpu.vector_store %arg4[%c0_3, %c0_4], %2 {strides = array<i32>} : memref<64x256xf32, #tpu.memory_space<vmem>>, vector<64x256xf32>,
    return
  }
  func.func @transform_0(%arg0: i32, %arg1: i32) -> (i32, i32) {
    %c0_i32 = arith.constant 0 : i32
    %c0_i32_0 = arith.constant 0 : i32
    return %arg0, %c0_i32 : i32, i32
  }
  func.func @transform_1(%arg0: i32, %arg1: i32) -> (i32, i32) {
    %c0_i32 = arith.constant 0 : i32
    %c0_i32_0 = arith.constant 0 : i32
    return %c0_i32, %arg1 : i32, i32
  }
  func.func @transform_2(%arg0: i32, %arg1: i32) -> (i32, i32) {
    %c0_i32 = arith.constant 0 : i32
    return %arg0, %arg1 : i32, i32
  }
}

</mosaic_0001>

<bundles_post_ra>
// kernel: causal_self_attention.3
= control target key start
LH: loop header
LB: loop body
LE: loop exit
PB: predicated region body
PF: predicated region fallthrough
CT: control target
= control target key end

     0   :  { %s1056_s9 = smov 0   ;;  %s1058_s10 = smov 0   ;;  %s1292_s0 = inlined_call_operand.vmem [shape: bf16[64,256], index: 0, kind: input, shape index: {}]   ;;  %s1293_s1 = inlined_call_operand.vmem [shape: bf16[256,768], index: 1, kind: input, shape index: {}]   ;;  %s1294_s2 = inlined_call_operand.vmem [shape: f32[64,768], index: 2, kind: output, shape index: {}]  }
   0x1   :  { %s1060_s11 = smov 0   ;;  %s1062_s12 = smov 0  }
   0x2   :  { %s1064_s13 = smov 0  }
   0x3 LB: > { %s21_s14 = sadd.s32 1, %s1035_s12  ;;  %s811_s15 = sadd.s32 4294967295, %s1039_s13   ;;  %s1039_s13 = sphi %s1064_s13, %s12_s13   ;;  %s1035_s12 = sphi %s1062_s12, %s1299_s12   ;;  %s1031_s11 = sphi %s1060_s11, %s1298_s11   ;;  %s1027_s10 = sphi %s1058_s10, %s1297_s10   ;;  %s1023_s9 = sphi %s1056_s9, %s1296_s9  }
   0x4   : > { %p22_p0 = scmp.ge.s32.totalorder %s21_s14, 3  ;;  %p64_p1 = scmp.ne.s32.totalorder %s1027_s10, %s1023_s9 }
   0x5   : > { %p65_p2 = scmp.eq.s32.totalorder %s1039_s13, 0  ;;  %p96_p4 = scmp.eq.s32.totalorder %s811_s15, 2 }
   0x6   : > { %s1301_s14 = smov (%p22_p0, %s21_s14), 0  ;;  %s57_s17 = sadd.s32 1, %s1027_s10 }
   0x7   : > { %p66_p3 = por %p65_p2, %p64_p1  ;;  %s54_s16 = ssub.s32 %s1035_s12, %s1301_s14 }
   0x8   : > { %p55_p5 = scmp.eq.s32.totalorder %s54_s16, 0  ;;  %p1091_p6 = por %p96_p4, %p64_p1 }
   0x9   : > { %p815_p7 = scmp.ge.s32.totalorder %s1039_s13, 3 }
   0xa   : > { %s1096_s19 = scalar_select %p55_p5, %s1027_s10, %s57_s17  }
   0xb   : > { %128 = sbr.rel (%p815_p7) target bundleno = 38 (0x26), region = 20 }
  0x12   : > { %131 = sbr.rel (!%p66_p3) target bundleno = 38 (0x26), region = 24  ;;  %s133_s20 = sand.u32 (%p66_p3), 1, %s1027_s10  }
  0x13   : > { %s867_s21 = sshll.u32 (%p66_p3), %s1035_s12, 3  ;;  %s816_s22 = sshll.u32 (%p66_p3), %s133_s20, 8 }
  0x14   : > { %s1104_s25 = scalar_lea.vmem (%p66_p3), %s1293_s1, %s867_s21  ;;  %s1109_s26 = scalar_lea.vmem (%p66_p3), [#allocation2], %s816_s22 }
  0x15   : > { %v228_v0 = vld [vmem:[%s1104_s25] sm:$0xff] (%p66_p3)  ;;  %v230_v1 = vld [vmem:[%s1104_s25 + $0x18] sm:$0xff] (%p66_p3)  ;;  %v232_v2 = vld [vmem:[%s1104_s25 + $0x30] sm:$0xff] (%p66_p3) }
  0x16   : > { %229 = vst [vmem:[%s1109_s26] sm:$0xff] (%p66_p3), %v228_v0  ;;  %231 = vst [vmem:[%s1109_s26 + $0x8] sm:$0xff] (%p66_p3), %v230_v1  ;;  %v234_v3 = vld [vmem:[%s1104_s25 + $0x48] sm:$0xff] (%p66_p3)  ;;  %v236_v4 = vld [vmem:[%s1104_s25 + $0x60] sm:$0xff] (%p66_p3) }
  0x17   : > { %233 = vst [vmem:[%s1109_s26 + $0x10] sm:$0xff] (%p66_p3), %v232_v2  ;;  %v238_v5 = vld [vmem:[%s1104_s25 + $0x78] sm:$0xff] (%p66_p3)  ;;  %235 = vst [vmem:[%s1109_s26 + $0x18] sm:$0xff] (%p66_p3), %v234_v3  ;;  %v240_v6 = vld [vmem:[%s1104_s25 + $0x90] sm:$0xff] (%p66_p3) }
  0x18   : > { %237 = vst [vmem:[%s1109_s26 + $0x20] sm:$0xff] (%p66_p3), %v236_v4  ;;  %239 = vst [vmem:[%s1109_s26 + $0x28] sm:$0xff] (%p66_p3), %v238_v5  ;;  %v242_v7 = vld [vmem:[%s1104_s25 + $0xa8] sm:$0xff] (%p66_p3)  ;;  %v244_v8 = vld [vmem:[%s1104_s25 + $0xc0] sm:$0xff] (%p66_p3) }
  0x19   : > { %241 = vst [vmem:[%s1109_s26 + $0x30] sm:$0xff] %v240_v6  ;;  %243 = vst [vmem:[%s1109_s26 + $0x38] sm:$0xff] %v242_v7  ;;  %v246_v9 = vld [vmem:[%s1104_s25 + $0xd8] sm:$0xff]  ;;  %v248_v10 = vld [vmem:[%s1104_s25 + $0xf0] sm:$0xff] }
  0x1a   : > { %245 = vst [vmem:[%s1109_s26 + $0x40] sm:$0xff] %v244_v8  ;;  %v250_v11 = vld [vmem:[%s1104_s25 + $0x108] sm:$0xff]  ;;  %247 = vst [vmem:[%s1109_s26 + $0x48] sm:$0xff] %v246_v9  ;;  %v252_v12 = vld [vmem:[%s1104_s25 + $0x120] sm:$0xff] }
  0x1b   : > { %249 = vst [vmem:[%s1109_s26 + $0x50] sm:$0xff] %v248_v10  ;;  %251 = vst [vmem:[%s1109_s26 + $0x58] sm:$0xff] %v250_v11  ;;  %v254_v13 = vld [vmem:[%s1104_s25 + $0x138] sm:$0xff]  ;;  %v256_v14 = vld [vmem:[%s1104_s25 + $0x150] sm:$0xff] }
  0x1c   : > { %253 = vst [vmem:[%s1109_s26 + $0x60] sm:$0xff] %v252_v12  ;;  %255 = vst [vmem:[%s1109_s26 + $0x68] sm:$0xff] %v254_v13  ;;  %v258_v15 = vld [vmem:[%s1104_s25 + $0x168] sm:$0xff]  ;;  %v260_v16 = vld [vmem:[%s1104_s25 + $0x180] sm:$0xff] }
  0x1d   : > { %257 = vst [vmem:[%s1109_s26 + $0x70] sm:$0xff] %v256_v14  ;;  %v262_v17 = vld [vmem:[%s1104_s25 + $0x198] sm:$0xff]  ;;  %259 = vst [vmem:[%s1109_s26 + $0x78] sm:$0xff] %v258_v15  ;;  %v264_v18 = vld [vmem:[%s1104_s25 + $0x1b0] sm:$0xff] }
  0x1e   : > { %261 = vst [vmem:[%s1109_s26 + $0x80] sm:$0xff] %v260_v16  ;;  %263 = vst [vmem:[%s1109_s26 + $0x88] sm:$0xff] %v262_v17  ;;  %v266_v19 = vld [vmem:[%s1104_s25 + $0x1c8] sm:$0xff]  ;;  %v268_v20 = vld [vmem:[%s1104_s25 + $0x1e0] sm:$0xff] }
  0x1f   : > { %265 = vst [vmem:[%s1109_s26 + $0x90] sm:$0xff] %v264_v18  ;;  %267 = vst [vmem:[%s1109_s26 + $0x98] sm:$0xff] %v266_v19  ;;  %v270_v21 = vld [vmem:[%s1104_s25 + $0x1f8] sm:$0xff]  ;;  %v272_v22 = vld [vmem:[%s1104_s25 + $0x210] sm:$0xff] }
  0x20   : > { %269 = vst [vmem:[%s1109_s26 + $0xa0] sm:$0xff] %v268_v20  ;;  %v274_v23 = vld [vmem:[%s1104_s25 + $0x228] sm:$0xff]  ;;  %271 = vst [vmem:[%s1109_s26 + $0xa8] sm:$0xff] %v270_v21  ;;  %v276_v24 = vld [vmem:[%s1104_s25 + $0x240] sm:$0xff] }
  0x21   : > { %273 = vst [vmem:[%s1109_s26 + $0xb0] sm:$0xff] %v272_v22  ;;  %275 = vst [vmem:[%s1109_s26 + $0xb8] sm:$0xff] %v274_v23  ;;  %v278_v25 = vld [vmem:[%s1104_s25 + $0x258] sm:$0xff]  ;;  %v280_v26 = vld [vmem:[%s1104_s25 + $0x270] sm:$0xff] }
  0x22   : > { %277 = vst [vmem:[%s1109_s26 + $0xc0] sm:$0xff] %v276_v24  ;;  %279 = vst [vmem:[%s1109_s26 + $0xc8] sm:$0xff] %v278_v25  ;;  %v282_v27 = vld [vmem:[%s1104_s25 + $0x288] sm:$0xff]  ;;  %v284_v28 = vld [vmem:[%s1104_s25 + $0x2a0] sm:$0xff] }
  0x23   : > { %281 = vst [vmem:[%s1109_s26 + $0xd0] sm:$0xff] %v280_v26  ;;  %v286_v29 = vld [vmem:[%s1104_s25 + $0x2b8] sm:$0xff]  ;;  %283 = vst [vmem:[%s1109_s26 + $0xd8] sm:$0xff] %v282_v27  ;;  %v288_v30 = vld [vmem:[%s1104_s25 + $0x2d0] sm:$0xff] }
  0x24   : > { %285 = vst [vmem:[%s1109_s26 + $0xe0] sm:$0xff] %v284_v28  ;;  %287 = vst [vmem:[%s1109_s26 + $0xe8] sm:$0xff] %v286_v29  ;;  %v290_v31 = vld [vmem:[%s1104_s25 + $0x2e8] sm:$0xff] }
  0x25   : > { %289 = vst [vmem:[%s1109_s26 + $0xf0] sm:$0xff] %v288_v30  ;;  %291 = vst [vmem:[%s1109_s26 + $0xf8] sm:$0xff] %v290_v31 }
  0x26 PF: > { %p819_p8 = scmp.ge.s32.totalorder %s1039_s13, 1  ;;  %p296_p9 = scmp.lt.s32.totalorder %s1039_s13, 4 }
  0x28   : > { %p297_p10 = pnand %p819_p8, %p296_p9 }
  0x29   : > { %s303_s27 = sand.u32 (!%p297_p10), 1, %s1023_s9   ;;  %v991_v32 = vld [vmem:[%s1292_s0 + $0x4] ss:$8 sps:$4 sm:$0xff] (!%p297_p10)   ;;  %v989_v2 = vld [vmem:[%s1292_s0] ss:$8 sps:$4 sm:$0xff] (!%p297_p10)  }
  0x2a   : > { %300 = sbr.rel (%p297_p10) target bundleno = 342 (0x156), region = 62  ;;  %s820_s28 = sshll.u32 (!%p297_p10), %s303_s27, 8  ;;  %v994_v33 = vld [vmem:[%s1292_s0 + $0x24] ss:$8 sps:$4 sm:$0xff] (!%p297_p10)   ;;  %611 = vmatprep.mubr.bf16.mxu0 (!%p297_p10), %v991_v32  ;;  %v992_v3 = vld [vmem:[%s1292_s0 + $0x20] ss:$8 sps:$4 sm:$0xff] (!%p297_p10)  }
  0x2b   : > { %s1183_s5 = scalar_lea.vmem (!%p297_p10), [#allocation2], %s820_s28  ;;  %631 = vmatprep.mubr.bf16.mxu1 (!%p297_p10), %v994_v33  ;;  %v995_v4 = vld [vmem:[%s1292_s0 + $0x14] ss:$8 sps:$4 sm:$0xff] (!%p297_p10)   ;;  %v999_v6 = vld [vmem:[%s1292_s0 + $0x10] ss:$8 sps:$4 sm:$0xff] (!%p297_p10)   ;;  %s821_s26 = sshll.u32 (!%p297_p10), %s303_s27, 7 }
  0x2c   : > { %v941_v34 = vld [vmem:[%s1183_s5 + $0x4] ss:$8 sps:$4 sm:$0xff] (!%p297_p10)   ;;  %v943_v35 = vld [vmem:[%s1183_s5] ss:$8 sps:$4 sm:$0xff] (!%p297_p10)   ;;  %v944_v36 = vld [vmem:[%s1183_s5 + $0x14] ss:$8 sps:$4 sm:$0xff] (!%p297_p10)  }
  0x2d   : > { %579 = vmatprep.subr.bf16.mxu0 (!%p297_p10), %v941_v34  ;;  %869 = vmatprep.subr.bf16.mxu1 (!%p297_p10), %v941_v34  ;;  %v946_v37 = vld [vmem:[%s1183_s5 + $0x10] ss:$8 sps:$4 sm:$0xff] (!%p297_p10)   ;;  %v947_v38 = vld [vmem:[%s1183_s5 + $0x24] ss:$8 sps:$4 sm:$0xff] (!%p297_p10)   ;;  %v949_v39 = vld [vmem:[%s1183_s5 + $0x20] ss:$8 sps:$4 sm:$0xff] (!%p297_p10)  }
  0x2e   : > { %580 = vmatpush1.bf16.msra.mxu0 (!%p297_p10), %v943_v35  ;;  %885 = vmatpush1.bf16.msra.mxu1 (!%p297_p10), %v943_v35  ;;  %v950_v40 = vld [vmem:[%s1183_s5 + $0x34] ss:$8 sps:$4 sm:$0xff] (!%p297_p10)   ;;  %v952_v41 = vld [vmem:[%s1183_s5 + $0x30] ss:$8 sps:$4 sm:$0xff] (!%p297_p10)   ;;  %v953_v42 = vld [vmem:[%s1183_s5 + $0x44] ss:$8 sps:$4 sm:$0xff] (!%p297_p10)  }
  0x2f   : > { %581 = vmatprep.subr.bf16.mxu0 (!%p297_p10), %v944_v36  ;;  %870 = vmatprep.subr.bf16.mxu1 (!%p297_p10), %v944_v36  ;;  %v955_v43 = vld [vmem:[%s1183_s5 + $0x40] ss:$8 sps:$4 sm:$0xff] (!%p297_p10)   ;;  %v956_v44 = vld [vmem:[%s1183_s5 + $0x54] ss:$8 sps:$4 sm:$0xff] (!%p297_p10)   ;;  %v958_v45 = vld [vmem:[%s1183_s5 + $0x50] ss:$8 sps:$4 sm:$0xff] (!%p297_p10)  }
  0x30   : > { %v959_v46 = vld [vmem:[%s1183_s5 + $0x64] ss:$8 sps:$4 sm:$0xff] (!%p297_p10)   ;;  %v961_v47 = vld [vmem:[%s1183_s5 + $0x60] ss:$8 sps:$4 sm:$0xff] (!%p297_p10)   ;;  %v962_v48 = vld [vmem:[%s1183_s5 + $0x74] ss:$8 sps:$4 sm:$0xff] (!%p297_p10)  }
  0x31   : > { %v964_v49 = vld [vmem:[%s1183_s5 + $0x70] ss:$8 sps:$4 sm:$0xff]   ;;  %v965_v50 = vld [vmem:[%s1183_s5 + $0x84] ss:$8 sps:$4 sm:$0xff]   ;;  %v967_v51 = vld [vmem:[%s1183_s5 + $0x80] ss:$8 sps:$4 sm:$0xff]  }
  0x32   : > { %582 = vmatpush1.bf16.msra.mxu0 %v946_v37  ;;  %886 = vmatpush1.bf16.msra.mxu1 %v946_v37  ;;  %v968_v52 = vld [vmem:[%s1183_s5 + $0x94] ss:$8 sps:$4 sm:$0xff]   ;;  %v970_v53 = vld [vmem:[%s1183_s5 + $0x90] ss:$8 sps:$4 sm:$0xff]   ;;  %v971_v54 = vld [vmem:[%s1183_s5 + $0xa4] ss:$8 sps:$4 sm:$0xff]  }
  0x33   : > { %583 = vmatprep.subr.bf16.mxu0 %v947_v38  ;;  %871 = vmatprep.subr.bf16.mxu1 %v947_v38  ;;  %v973_v55 = vld [vmem:[%s1183_s5 + $0xa0] ss:$8 sps:$4 sm:$0xff]   ;;  %v974_v56 = vld [vmem:[%s1183_s5 + $0xb4] ss:$8 sps:$4 sm:$0xff]   ;;  %v976_v57 = vld [vmem:[%s1183_s5 + $0xb0] ss:$8 sps:$4 sm:$0xff]  }
  0x34   : > { %v977_v58 = vld [vmem:[%s1183_s5 + $0xc4] ss:$8 sps:$4 sm:$0xff]   ;;  %v979_v59 = vld [vmem:[%s1183_s5 + $0xc0] ss:$8 sps:$4 sm:$0xff]   ;;  %v980_v60 = vld [vmem:[%s1183_s5 + $0xd4] ss:$8 sps:$4 sm:$0xff]  }
  0x35   : > { %v982_v61 = vld [vmem:[%s1183_s5 + $0xd0] ss:$8 sps:$4 sm:$0xff]   ;;  %v983_v62 = vld [vmem:[%s1183_s5 + $0xe4] ss:$8 sps:$4 sm:$0xff]   ;;  %v985_v63 = vld [vmem:[%s1183_s5 + $0xe0] ss:$8 sps:$4 sm:$0xff]  }
  0x36   : > { %584 = vmatpush1.bf16.msra.mxu0 %v949_v39  ;;  %887 = vmatpush1.bf16.msra.mxu1 %v949_v39  ;;  %v986_v0 = vld [vmem:[%s1183_s5 + $0xf4] ss:$8 sps:$4 sm:$0xff]   ;;  %v988_v1 = vld [vmem:[%s1183_s5 + $0xf0] ss:$8 sps:$4 sm:$0xff]   ;;  %s1237_s28 = scalar_lea.vmem [#allocation3], %s821_s26  ;;  %s868_s9 = sshll.u32 (%p1091_p6), %s1031_s11, 4 }
  0x37   : > { %585 = vmatprep.subr.bf16.mxu0 %v950_v40  ;;  %872 = vmatprep.subr.bf16.mxu1 %v950_v40  ;;  %v997_v5 = vld [vmem:[%s1292_s0 + $0x34] ss:$8 sps:$4 sm:$0xff]   ;;  %v1000_v7 = vld [vmem:[%s1292_s0 + $0x30] ss:$8 sps:$4 sm:$0xff]   ;;  %s680_s30 = scalar_lea.vmem (%p1091_p6), %s1294_s2, %s868_s9 }
  0x3a   : > { %586 = vmatpush1.bf16.msra.mxu0 %v952_v41  ;;  %888 = vmatpush1.bf16.msra.mxu1 %v952_v41 }
  0x3b   : > { %587 = vmatprep.subr.bf16.mxu0 %v953_v42  ;;  %873 = vmatprep.subr.bf16.mxu1 %v953_v42 }
  0x3e   : > { %588 = vmatpush1.bf16.msra.mxu0 %v955_v43  ;;  %889 = vmatpush1.bf16.msra.mxu1 %v955_v43 }
  0x3f   : > { %589 = vmatprep.subr.bf16.mxu0 %v956_v44  ;;  %874 = vmatprep.subr.bf16.mxu1 %v956_v44 }
  0x42   : > { %590 = vmatpush1.bf16.msra.mxu0 %v958_v45  ;;  %890 = vmatpush1.bf16.msra.mxu1 %v958_v45 }
  0x43   : > { %591 = vmatprep.subr.bf16.mxu0 %v959_v46  ;;  %875 = vmatprep.subr.bf16.mxu1 %v959_v46 }
  0x46   : > { %592 = vmatpush1.bf16.msra.mxu0 %v961_v47  ;;  %891 = vmatpush1.bf16.msra.mxu1 %v961_v47 }
  0x47   : > { %593 = vmatprep.subr.bf16.mxu0 %v962_v48  ;;  %876 = vmatprep.subr.bf16.mxu1 %v962_v48 }
  0x4a   : > { %594 = vmatpush1.bf16.msra.mxu0 %v964_v49  ;;  %892 = vmatpush1.bf16.msra.mxu1 %v964_v49 }
  0x4b   : > { %595 = vmatprep.subr.bf16.mxu0 %v965_v50  ;;  %877 = vmatprep.subr.bf16.mxu1 %v965_v50 }
  0x4e   : > { %596 = vmatpush1.bf16.msra.mxu0 %v967_v51  ;;  %893 = vmatpush1.bf16.msra.mxu1 %v967_v51 }
  0x4f   : > { %597 = vmatprep.subr.bf16.mxu0 %v968_v52  ;;  %878 = vmatprep.subr.bf16.mxu1 %v968_v52 }
  0x52   : > { %598 = vmatpush1.bf16.msra.mxu0 %v970_v53  ;;  %894 = vmatpush1.bf16.msra.mxu1 %v970_v53 }
  0x53   : > { %599 = vmatprep.subr.bf16.mxu0 %v971_v54  ;;  %879 = vmatprep.subr.bf16.mxu1 %v971_v54 }
  0x56   : > { %600 = vmatpush1.bf16.msra.mxu0 %v973_v55  ;;  %895 = vmatpush1.bf16.msra.mxu1 %v973_v55 }
  0x57   : > { %601 = vmatprep.subr.bf16.mxu0 %v974_v56  ;;  %880 = vmatprep.subr.bf16.mxu1 %v974_v56 }
  0x5a   : > { %602 = vmatpush1.bf16.msra.mxu0 %v976_v57  ;;  %896 = vmatpush1.bf16.msra.mxu1 %v976_v57 }
  0x5b   : > { %603 = vmatprep.subr.bf16.mxu0 %v977_v58  ;;  %881 = vmatprep.subr.bf16.mxu1 %v977_v58 }
  0x5e   : > { %604 = vmatpush1.bf16.msra.mxu0 %v979_v59  ;;  %897 = vmatpush1.bf16.msra.mxu1 %v979_v59 }
  0x5f   : > { %605 = vmatprep.subr.bf16.mxu0 %v980_v60  ;;  %882 = vmatprep.subr.bf16.mxu1 %v980_v60 }
  0x62   : > { %606 = vmatpush1.bf16.msra.mxu0 %v982_v61  ;;  %898 = vmatpush1.bf16.msra.mxu1 %v982_v61 }
  0x63   : > { %607 = vmatprep.subr.bf16.mxu0 %v983_v62  ;;  %883 = vmatprep.subr.bf16.mxu1 %v983_v62 }
  0x66   : > { %608 = vmatpush1.bf16.msra.mxu0 %v985_v63  ;;  %899 = vmatpush1.bf16.msra.mxu1 %v985_v63 }
  0x67   : > { %609 = vmatprep.subr.bf16.mxu0 %v986_v0  ;;  %884 = vmatprep.subr.bf16.mxu1 %v986_v0 }
  0x6a   : > { %610 = vmatpush1.bf16.msra.mxu0 %v988_v1  ;;  %900 = vmatpush1.bf16.msra.mxu1 %v988_v1 }
  0x6d   : > { %612 = vmatmul.mubr.bf16.vlgmr.msra.gmra.mrb[0].mxu0 %v989_v2  ;;  %632 = vmatmul.mubr.bf16.vlgmr.msra.gmra.mrb[0].mxu1 %v992_v3 }
  0x6e   : > { %621 = vmatprep.mubr.bf16.mxu0 %v995_v4  ;;  %641 = vmatprep.mubr.bf16.mxu1 %v997_v5 }
  0x75   : > { %622 = vmatmul.mubr.bf16.gmra.mrb[4].mxu0 %v999_v6  ;;  %642 = vmatmul.mubr.bf16.gmra.mrb[4].mxu1 %v1000_v7 }
 0x140   : > { %v613_v8 = vpop.f32.mrb[0].mxu0  ;;  %v633_v9 = vpop.f32.mrb[0].mxu1 }
 0x141   : > { %652 = vst [vmem:[%s1237_s28] sm:$0xff] %v613_v8  ;;  %660 = vst [vmem:[%s1237_s28 + $0x40] sm:$0xff] %v633_v9  ;;  %v615_v10 = vpop.f32.mrb[1].mxu0  ;;  %v635_v11 = vpop.f32.mrb[1].mxu1 }
 0x142   : > { %653 = vst [vmem:[%s1237_s28 + $0x8] sm:$0xff] %v615_v10  ;;  %661 = vst [vmem:[%s1237_s28 + $0x48] sm:$0xff] %v635_v11  ;;  %v617_v12 = vpop.f32.mrb[2].mxu0  ;;  %v637_v13 = vpop.f32.mrb[2].mxu1 }
 0x143   : > { %654 = vst [vmem:[%s1237_s28 + $0x10] sm:$0xff] %v617_v12  ;;  %662 = vst [vmem:[%s1237_s28 + $0x50] sm:$0xff] %v637_v13  ;;  %v619_v14 = vpop.f32.mrb[3].mxu0  ;;  %v639_v15 = vpop.f32.mrb[3].mxu1 }
 0x144   : > { %655 = vst [vmem:[%s1237_s28 + $0x18] sm:$0xff] %v619_v14  ;;  %663 = vst [vmem:[%s1237_s28 + $0x58] sm:$0xff] %v639_v15 }
 0x146   : > { %674 = sbr.rel (!%p1091_p6) target bundleno = 342 (0x156), region = 70 }
 0x148   : > { %v623_v16 = vpop.f32.mrb[4].mxu0  ;;  %v643_v17 = vpop.f32.mrb[4].mxu1  ;;  %v693_v24 = vld [vmem:[%s1237_s28] sm:$0xff] (%p1091_p6) }
 0x149   : > { %656 = vst [vmem:[%s1237_s28 + $0x20] sm:$0xff] %v623_v16  ;;  %664 = vst [vmem:[%s1237_s28 + $0x60] sm:$0xff] %v643_v17  ;;  %v625_v18 = vpop.f32.mrb[5].mxu0  ;;  %v645_v19 = vpop.f32.mrb[5].mxu1  ;;  %v695_v25 = vld [vmem:[%s1237_s28 + $0x8] sm:$0xff] (%p1091_p6)  ;;  %v709_v32 = vld [vmem:[%s1237_s28 + $0x40] sm:$0xff] (%p1091_p6) }
 0x14a   : > { %657 = vst [vmem:[%s1237_s28 + $0x28] sm:$0xff] %v625_v18  ;;  %665 = vst [vmem:[%s1237_s28 + $0x68] sm:$0xff] %v645_v19  ;;  %v627_v20 = vpop.f32.mrb[6].mxu0  ;;  %v647_v21 = vpop.f32.mrb[6].mxu1  ;;  %v697_v26 = vld [vmem:[%s1237_s28 + $0x10] sm:$0xff] (%p1091_p6)  ;;  %v711_v33 = vld [vmem:[%s1237_s28 + $0x48] sm:$0xff] (%p1091_p6) }
 0x14b   : > { %658 = vst [vmem:[%s1237_s28 + $0x30] sm:$0xff] %v627_v20  ;;  %666 = vst [vmem:[%s1237_s28 + $0x70] sm:$0xff] %v647_v21  ;;  %v629_v22 = vpop.f32.mrb[7].mxu0  ;;  %v649_v23 = vpop.f32.mrb[7].mxu1  ;;  %v699_v27 = vld [vmem:[%s1237_s28 + $0x18] sm:$0xff] (%p1091_p6)  ;;  %v713_v34 = vld [vmem:[%s1237_s28 + $0x50] sm:$0xff] (%p1091_p6) }
 0x14c   : > { %659 = vst [vmem:[%s1237_s28 + $0x38] sm:$0xff] %v629_v22  ;;  %667 = vst [vmem:[%s1237_s28 + $0x78] sm:$0xff] %v649_v23  ;;  %v715_v35 = vld [vmem:[%s1237_s28 + $0x58] sm:$0xff] (%p1091_p6) }
 0x14d   : > { %694 = vst [vmem:[%s680_s30] sm:$0xff] %v693_v24  ;;  %696 = vst [vmem:[%s680_s30 + $0x8] sm:$0xff] %v695_v25 }
 0x14e   : > { %698 = vst [vmem:[%s680_s30 + $0x30] sm:$0xff] %v697_v26  ;;  %700 = vst [vmem:[%s680_s30 + $0x38] sm:$0xff] %v699_v27 }
 0x14f   : > { %710 = vst [vmem:[%s680_s30 + $0xc0] sm:$0xff] %v709_v32  ;;  %712 = vst [vmem:[%s680_s30 + $0xc8] sm:$0xff] %v711_v33 }
 0x150   : > { %v701_v28 = vld [vmem:[%s1237_s28 + $0x20] sm:$0xff]  ;;  %714 = vst [vmem:[%s680_s30 + $0xf0] sm:$0xff] %v713_v34  ;;  %716 = vst [vmem:[%s680_s30 + $0xf8] sm:$0xff] %v715_v35 }
 0x151   : > { %v703_v29 = vld [vmem:[%s1237_s28 + $0x28] sm:$0xff]  ;;  %702 = vst [vmem:[%s680_s30 + $0x60] sm:$0xff] %v701_v28  ;;  %v717_v36 = vld [vmem:[%s1237_s28 + $0x60] sm:$0xff] }
 0x152   : > { %704 = vst [vmem:[%s680_s30 + $0x68] sm:$0xff] %v703_v29  ;;  %v705_v30 = vld [vmem:[%s1237_s28 + $0x30] sm:$0xff]  ;;  %v719_v37 = vld [vmem:[%s1237_s28 + $0x68] sm:$0xff]  ;;  %718 = vst [vmem:[%s680_s30 + $0x120] sm:$0xff] %v717_v36 }
 0x153   : > { %v707_v31 = vld [vmem:[%s1237_s28 + $0x38] sm:$0xff]  ;;  %706 = vst [vmem:[%s680_s30 + $0x90] sm:$0xff] %v705_v30  ;;  %v721_v38 = vld [vmem:[%s1237_s28 + $0x70] sm:$0xff]  ;;  %720 = vst [vmem:[%s680_s30 + $0x128] sm:$0xff] %v719_v37 }
 0x154   : > { %708 = vst [vmem:[%s680_s30 + $0x98] sm:$0xff] %v707_v31  ;;  %722 = vst [vmem:[%s680_s30 + $0x150] sm:$0xff] %v721_v38  ;;  %v723_v39 = vld [vmem:[%s1237_s28 + $0x78] sm:$0xff] }
 0x155   : > { %724 = vst [vmem:[%s680_s30 + $0x158] sm:$0xff] %v723_v39 }
 0x156 PF: > { %s12_s13 = sadd.s32 1, %s1039_s13   ;;  %s1296_s9 = smov %s1027_s10 }
 0x157   : > { %p9_p11 = scmp.ge.s32.totalorder %s12_s13, 5   ;;  %s1297_s10 = smov %s1096_s19 }
 0x158   : > { %s1298_s11 = smov %s1035_s12  ;;  %s1299_s12 = smov %s1301_s14 }
 0x159   :  { %11 = sbr.rel (!%p9_p11) target bundleno = 3 (0x3), region = 127 }

// kernel: causal_self_attention.5
= control target key start
LH: loop header
LB: loop body
LE: loop exit
PB: predicated region body
PF: predicated region fallthrough
CT: control target
= control target key end

     0   :  { %s666_s0 = inlined_call_operand.vmem [shape: bf16[64,256], index: 0, kind: input, shape index: {}]   ;;  %s667_s1 = inlined_call_operand.vmem [shape: bf16[256,256], index: 1, kind: input, shape index: {}]   ;;  %s668_s2 = inlined_call_operand.hbm [shape: f32[64,256], index: 2, kind: output, shape index: {}]  }
   0x1   :  { %v432_v0 = vld [vmem:[%s667_s1 + $0x4] ss:$8 sps:$4 sm:$0xff]   ;;  %v434_v1 = vld [vmem:[%s667_s1] ss:$8 sps:$4 sm:$0xff]   ;;  %v435_v2 = vld [vmem:[%s667_s1 + $0x14] ss:$8 sps:$4 sm:$0xff]  }
   0x2   :  { %252 = vmatprep.subr.bf16.mxu0 %v432_v0  ;;  %397 = vmatprep.subr.bf16.mxu1 %v432_v0  ;;  %v437_v3 = vld [vmem:[%s667_s1 + $0x10] ss:$8 sps:$4 sm:$0xff]   ;;  %v438_v4 = vld [vmem:[%s667_s1 + $0x24] ss:$8 sps:$4 sm:$0xff]   ;;  %v440_v5 = vld [vmem:[%s667_s1 + $0x20] ss:$8 sps:$4 sm:$0xff]  }
   0x3   :  { %253 = vmatpush1.bf16.msra.mxu0 %v434_v1  ;;  %413 = vmatpush1.bf16.msra.mxu1 %v434_v1  ;;  %v441_v6 = vld [vmem:[%s667_s1 + $0x34] ss:$8 sps:$4 sm:$0xff]   ;;  %v443_v7 = vld [vmem:[%s667_s1 + $0x30] ss:$8 sps:$4 sm:$0xff]   ;;  %v444_v8 = vld [vmem:[%s667_s1 + $0x44] ss:$8 sps:$4 sm:$0xff]  }
   0x4   :  { %254 = vmatprep.subr.bf16.mxu0 %v435_v2  ;;  %398 = vmatprep.subr.bf16.mxu1 %v435_v2  ;;  %v446_v9 = vld [vmem:[%s667_s1 + $0x40] ss:$8 sps:$4 sm:$0xff]   ;;  %v447_v10 = vld [vmem:[%s667_s1 + $0x54] ss:$8 sps:$4 sm:$0xff]   ;;  %v449_v11 = vld [vmem:[%s667_s1 + $0x50] ss:$8 sps:$4 sm:$0xff]  }
   0x5   :  { %v450_v12 = vld [vmem:[%s667_s1 + $0x64] ss:$8 sps:$4 sm:$0xff]   ;;  %v452_v14 = vld [vmem:[%s667_s1 + $0x60] ss:$8 sps:$4 sm:$0xff]   ;;  %v453_v16 = vld [vmem:[%s667_s1 + $0x74] ss:$8 sps:$4 sm:$0xff]  }
   0x6   :  { %v482_v13 = vld [vmem:[%s666_s0 + $0x4] ss:$8 sps:$4 sm:$0xff]  }
   0x7   :  { %255 = vmatpush1.bf16.msra.mxu0 %v437_v3  ;;  %414 = vmatpush1.bf16.msra.mxu1 %v437_v3  ;;  %v485_v15 = vld [vmem:[%s666_s0 + $0x24] ss:$8 sps:$4 sm:$0xff]  }
   0x8   :  { %256 = vmatprep.subr.bf16.mxu0 %v438_v4  ;;  %399 = vmatprep.subr.bf16.mxu1 %v438_v4 }
   0x9   :  { %284 = vmatprep.mubr.bf16.mxu0 %v482_v13  ;;  %304 = vmatprep.mubr.bf16.mxu1 %v485_v15 }
   0xb   :  { %257 = vmatpush1.bf16.msra.mxu0 %v440_v5  ;;  %415 = vmatpush1.bf16.msra.mxu1 %v440_v5 }
   0xc   :  { %258 = vmatprep.subr.bf16.mxu0 %v441_v6  ;;  %400 = vmatprep.subr.bf16.mxu1 %v441_v6 }
   0xf   :  { %259 = vmatpush1.bf16.msra.mxu0 %v443_v7  ;;  %416 = vmatpush1.bf16.msra.mxu1 %v443_v7 }
  0x10   :  { %260 = vmatprep.subr.bf16.mxu0 %v444_v8  ;;  %401 = vmatprep.subr.bf16.mxu1 %v444_v8 }
  0x13   :  { %261 = vmatpush1.bf16.msra.mxu0 %v446_v9  ;;  %417 = vmatpush1.bf16.msra.mxu1 %v446_v9 }
  0x14   :  { %262 = vmatprep.subr.bf16.mxu0 %v447_v10  ;;  %402 = vmatprep.subr.bf16.mxu1 %v447_v10 }
  0x17   :  { %263 = vmatpush1.bf16.msra.mxu0 %v449_v11  ;;  %418 = vmatpush1.bf16.msra.mxu1 %v449_v11 }
  0x18   :  { %264 = vmatprep.subr.bf16.mxu0 %v450_v12  ;;  %403 = vmatprep.subr.bf16.mxu1 %v450_v12 }
  0x19   :  { %7 = vsyncpa [#allocation3], 0  ;;  %v455_v17 = vld [vmem:[%s667_s1 + $0x70] ss:$8 sps:$4 sm:$0xff]   ;;  %v456_v18 = vld [vmem:[%s667_s1 + $0x84] ss:$8 sps:$4 sm:$0xff]  }
  0x1a   :  { %v458_v19 = vld [vmem:[%s667_s1 + $0x80] ss:$8 sps:$4 sm:$0xff]   ;;  %v459_v20 = vld [vmem:[%s667_s1 + $0x94] ss:$8 sps:$4 sm:$0xff]   ;;  %v461_v21 = vld [vmem:[%s667_s1 + $0x90] ss:$8 sps:$4 sm:$0xff]  }
  0x1b   :  { %265 = vmatpush1.bf16.msra.mxu0 %v452_v14  ;;  %419 = vmatpush1.bf16.msra.mxu1 %v452_v14  ;;  %v462_v22 = vld [vmem:[%s667_s1 + $0xa4] ss:$8 sps:$4 sm:$0xff]   ;;  %v464_v23 = vld [vmem:[%s667_s1 + $0xa0] ss:$8 sps:$4 sm:$0xff]   ;;  %v465_v24 = vld [vmem:[%s667_s1 + $0xb4] ss:$8 sps:$4 sm:$0xff]  }
  0x1c   :  { %266 = vmatprep.subr.bf16.mxu0 %v453_v16  ;;  %404 = vmatprep.subr.bf16.mxu1 %v453_v16  ;;  %v467_v25 = vld [vmem:[%s667_s1 + $0xb0] ss:$8 sps:$4 sm:$0xff]   ;;  %v468_v26 = vld [vmem:[%s667_s1 + $0xc4] ss:$8 sps:$4 sm:$0xff]   ;;  %v470_v27 = vld [vmem:[%s667_s1 + $0xc0] ss:$8 sps:$4 sm:$0xff]  }
  0x1d   :  { %v471_v28 = vld [vmem:[%s667_s1 + $0xd4] ss:$8 sps:$4 sm:$0xff]   ;;  %v473_v29 = vld [vmem:[%s667_s1 + $0xd0] ss:$8 sps:$4 sm:$0xff]   ;;  %v474_v30 = vld [vmem:[%s667_s1 + $0xe4] ss:$8 sps:$4 sm:$0xff]  }
  0x1e   :  { %v476_v31 = vld [vmem:[%s667_s1 + $0xe0] ss:$8 sps:$4 sm:$0xff]   ;;  %v477_v32 = vld [vmem:[%s667_s1 + $0xf4] ss:$8 sps:$4 sm:$0xff]   ;;  %v479_v33 = vld [vmem:[%s667_s1 + $0xf0] ss:$8 sps:$4 sm:$0xff]  }
  0x1f   :  { %267 = vmatpush1.bf16.msra.mxu0 %v455_v17  ;;  %420 = vmatpush1.bf16.msra.mxu1 %v455_v17  ;;  %v480_v34 = vld [vmem:[%s666_s0] ss:$8 sps:$4 sm:$0xff]   ;;  %v486_v36 = vld [vmem:[%s666_s0 + $0x14] ss:$8 sps:$4 sm:$0xff]   ;;  %v490_v38 = vld [vmem:[%s666_s0 + $0x10] ss:$8 sps:$4 sm:$0xff]  }
  0x20   :  { %268 = vmatprep.subr.bf16.mxu0 %v456_v18  ;;  %405 = vmatprep.subr.bf16.mxu1 %v456_v18  ;;  %v483_v35 = vld [vmem:[%s666_s0 + $0x20] ss:$8 sps:$4 sm:$0xff]   ;;  %v488_v37 = vld [vmem:[%s666_s0 + $0x34] ss:$8 sps:$4 sm:$0xff]   ;;  %v491_v39 = vld [vmem:[%s666_s0 + $0x30] ss:$8 sps:$4 sm:$0xff]  }
  0x21   :  { %s516_s4 = smov [#allocation2]  }
  0x22   :  { %s346_s0 = sshll.u32 %s516_s4, 4  ;;  %s347_s0 = int_to_ptr.vmem [resolvable:$true] %s346_s0 }
  0x23   :  { %269 = vmatpush1.bf16.msra.mxu0 %v458_v19  ;;  %421 = vmatpush1.bf16.msra.mxu1 %v458_v19  ;;  %s492_s5 = scalar_lea.vmem %s347_s0, 2048  ;;  %p497_p1 = scmp.lt.s32.totalorder %s347_s0, %s347_s0 }
  0x24   :  { %270 = vmatprep.subr.bf16.mxu0 %v459_v20  ;;  %406 = vmatprep.subr.bf16.mxu1 %v459_v20  ;;  %p493_p0 = scmp.ne.s32.totalorder %s347_s0, %s492_s5  ;;  %p498_p2 = scmp.lt.s32.totalorder %s492_s5, %s492_s5 }
  0x26   :  { %p499_p3 = por %p498_p2, %p497_p1 }
  0x27   :  { %271 = vmatpush1.bf16.msra.mxu0 %v461_v21  ;;  %422 = vmatpush1.bf16.msra.mxu1 %v461_v21 }
  0x28   :  { %272 = vmatprep.subr.bf16.mxu0 %v462_v22  ;;  %407 = vmatprep.subr.bf16.mxu1 %v462_v22  ;;  %p500_p4 = pnand %p499_p3, %p493_p0 }
  0x2b   :  { %273 = vmatpush1.bf16.msra.mxu0 %v464_v23  ;;  %423 = vmatpush1.bf16.msra.mxu1 %v464_v23 }
  0x2c   :  { %274 = vmatprep.subr.bf16.mxu0 %v465_v24  ;;  %408 = vmatprep.subr.bf16.mxu1 %v465_v24 }
  0x2f   :  { %275 = vmatpush1.bf16.msra.mxu0 %v467_v25  ;;  %424 = vmatpush1.bf16.msra.mxu1 %v467_v25 }
  0x30   :  { %276 = vmatprep.subr.bf16.mxu0 %v468_v26  ;;  %409 = vmatprep.subr.bf16.mxu1 %v468_v26 }
  0x33   :  { %277 = vmatpush1.bf16.msra.mxu0 %v470_v27  ;;  %425 = vmatpush1.bf16.msra.mxu1 %v470_v27 }
  0x34   :  { %278 = vmatprep.subr.bf16.mxu0 %v471_v28  ;;  %410 = vmatprep.subr.bf16.mxu1 %v471_v28 }
  0x37   :  { %279 = vmatpush1.bf16.msra.mxu0 %v473_v29  ;;  %426 = vmatpush1.bf16.msra.mxu1 %v473_v29 }
  0x38   :  { %280 = vmatprep.subr.bf16.mxu0 %v474_v30  ;;  %411 = vmatprep.subr.bf16.mxu1 %v474_v30 }
  0x3b   :  { %281 = vmatpush1.bf16.msra.mxu0 %v476_v31  ;;  %427 = vmatpush1.bf16.msra.mxu1 %v476_v31 }
  0x3c   :  { %282 = vmatprep.subr.bf16.mxu0 %v477_v32  ;;  %412 = vmatprep.subr.bf16.mxu1 %v477_v32 }
  0x3f   :  { %283 = vmatpush1.bf16.msra.mxu0 %v479_v33  ;;  %428 = vmatpush1.bf16.msra.mxu1 %v479_v33 }
  0x42   :  { %285 = vmatmul.mubr.bf16.vlgmr.msra.gmra.mrb[0].mxu0 %v480_v34  ;;  %305 = vmatmul.mubr.bf16.vlgmr.msra.gmra.mrb[0].mxu1 %v483_v35 }
  0x43   :  { %294 = vmatprep.mubr.bf16.mxu0 %v486_v36  ;;  %314 = vmatprep.mubr.bf16.mxu1 %v488_v37 }
  0x4a   :  { %295 = vmatmul.mubr.bf16.gmra.mrb[4].mxu0 %v490_v38  ;;  %315 = vmatmul.mubr.bf16.gmra.mrb[4].mxu1 %v491_v39 }
 0x115   :  { %v286_v40 = vpop.f32.mrb[0].mxu0  ;;  %v306_v41 = vpop.f32.mrb[0].mxu1 }
 0x116   :  { %325 = vst [vmem:[#allocation2] sm:$0xff] %v286_v40  ;;  %333 = vst [vmem:[#allocation2 + $0x40] sm:$0xff] %v306_v41  ;;  %v288_v42 = vpop.f32.mrb[1].mxu0  ;;  %v308_v43 = vpop.f32.mrb[1].mxu1 }
 0x117   :  { %326 = vst [vmem:[#allocation2 + $0x8] sm:$0xff] %v288_v42  ;;  %334 = vst [vmem:[#allocation2 + $0x48] sm:$0xff] %v308_v43  ;;  %v290_v44 = vpop.f32.mrb[2].mxu0  ;;  %v310_v45 = vpop.f32.mrb[2].mxu1 }
 0x118   :  { %327 = vst [vmem:[#allocation2 + $0x10] sm:$0xff] %v290_v44  ;;  %335 = vst [vmem:[#allocation2 + $0x50] sm:$0xff] %v310_v45  ;;  %v292_v46 = vpop.f32.mrb[3].mxu0  ;;  %v312_v47 = vpop.f32.mrb[3].mxu1 }
 0x119   :  { %328 = vst [vmem:[#allocation2 + $0x18] sm:$0xff] %v292_v46  ;;  %336 = vst [vmem:[#allocation2 + $0x58] sm:$0xff] %v312_v47 }
 0x11d   :  { %v296_v48 = vpop.f32.mrb[4].mxu0  ;;  %v316_v49 = vpop.f32.mrb[4].mxu1 }
 0x11e   :  { %329 = vst [vmem:[#allocation2 + $0x20] sm:$0xff] %v296_v48  ;;  %337 = vst [vmem:[#allocation2 + $0x60] sm:$0xff] %v316_v49  ;;  %v298_v50 = vpop.f32.mrb[5].mxu0  ;;  %v318_v51 = vpop.f32.mrb[5].mxu1 }
 0x11f   :  { %330 = vst [vmem:[#allocation2 + $0x28] sm:$0xff] %v298_v50  ;;  %338 = vst [vmem:[#allocation2 + $0x68] sm:$0xff] %v318_v51  ;;  %v300_v52 = vpop.f32.mrb[6].mxu0  ;;  %v320_v53 = vpop.f32.mrb[6].mxu1 }
 0x120   :  { %331 = vst [vmem:[#allocation2 + $0x30] sm:$0xff] %v300_v52  ;;  %339 = vst [vmem:[#allocation2 + $0x70] sm:$0xff] %v320_v53  ;;  %v302_v54 = vpop.f32.mrb[7].mxu0  ;;  %v322_v55 = vpop.f32.mrb[7].mxu1 }
 0x121   :  { %332 = vst [vmem:[#allocation2 + $0x38] sm:$0xff] %v302_v54  ;;  %340 = vst [vmem:[#allocation2 + $0x78] sm:$0xff] %v322_v55 }
 0x122   :  { %503 = shalt.err (!%p500_p4)
}
 0x123   :  { %s504_s8 = scalar_lea.hbm %s668_s2, 2048 }
 0x124   :  { %p505_p5 = scmp.ne.s32.totalorder %s668_s2, %s504_s8  ;;  %p508_p6 = scmp.lt.u32.totalorder %s504_s8, %s668_s2 }
 0x126   :  { %p510_p7 = pnand %p508_p6, %p505_p5 }
 0x128   :  { %513 = shalt.err (!%p510_p7)
}
 0x129   :  { %s517_s13 = smov 256   ;;  %s518_s14 = smov 16  }
 0x12a   :  { %352 = dma.vmem_to_hbm [thread:$0]  %s347_s0, 2048, %s668_s2, [#allocation3], %s517_s13, %s517_s13, %s518_s14  }
 0x12b   :  { %514 = dma.done.wait [#allocation3], 2048  }
 0x12c   :  { %515 = vsyncadd [#allocation3], 4294965248 }
 0x12d   :  { %356 = vsyncpa [#allocation3], 1 }

// kernel: causal_self_attention.4
= control target key start
LH: loop header
LB: loop body
LE: loop exit
PB: predicated region body
PF: predicated region fallthrough
CT: control target
= control target key end

     0   :  { %s1076_s18 = smov 0   ;;  %s1078_s19 = smov 0   ;;  %s1190_s0 = inlined_call_operand.vmem [shape: f32[2,2,32,128], index: 0, kind: input, shape index: {}]   ;;  %s1191_s1 = inlined_call_operand.vmem [shape: f32[2,2,32,128], index: 1, kind: input, shape index: {}]   ;;  %s1192_s2 = inlined_call_operand.vmem [shape: bf16[2,2,32,128], index: 2, kind: input, shape index: {}]   ;;  %s1193_s3 = inlined_call_operand.vmem [shape: f32[32,128], index: 3, kind: input, shape index: {}]   ;;  %s1194_s4 = inlined_call_operand.vmem [shape: f32[32,128], index: 4, kind: input, shape index: {}]   ;;  %s1195_s5 = inlined_call_operand.vmem [shape: bf16[2,2,32,128], index: 5, kind: output, shape index: {}]  }
   0x1   :  { %s1080_s20 = smov 0   ;;  %s1082_s21 = smov 0  }
   0x2   :  { %s1084_s22 = smov 0  }
   0x3 LB: > { %s30_s23 = sadd.s32 1, %s1035_s20  ;;  %s34_s24 = sadd.s32 1, %s1039_s21  ;;  %s1043_s22 = sphi %s1084_s22, %s15_s22   ;;  %s1039_s21 = sphi %s1082_s21, %s1199_s21   ;;  %s1035_s20 = sphi %s1080_s20, %s1198_s20   ;;  %s1031_s19 = sphi %s1078_s19, %s1197_s19   ;;  %s1027_s18 = sphi %s1076_s18, %s1196_s18  }
   0x4   : > { %p32_p0 = scmp.ge.s32.totalorder %s30_s23, 2  ;;  %p868_p1 = scmp.ge.s32.totalorder %s1043_s22, 1 }
   0x5   : > { %p255_p2 = scmp.lt.s32.totalorder %s1043_s22, 5 }
   0x6   : > { %s1201_s23 = smov (%p32_p0, %s30_s23), 0  ;;  %s1203_s24 = smov (!%p32_p0, %s34_s24), %s1039_s21 }
   0x7   : > { %p256_p3 = pnand %p868_p1, %p255_p2  ;;  %p36_p4 = scmp.ge.s32.totalorder %s1203_s24, 2 }
   0x8   : > { %p318_p5 = scmp.lt.s32.totalorder (!%p256_p3), %s1031_s19, 1  ;;  %p320_p6 = scmp.lt.s32.totalorder (!%p256_p3), %s1027_s18, 1  ;;  %v369_v56 = vld [vmem:[%s1194_s4] sm:$0xff] (!%p256_p3)  ;;  %v366_v59 = vld [vmem:[%s1193_s3 + $0x8] sm:$0xff] (!%p256_p3)  ;;  %vm565_vm1 = vcmask (!%p256_p3), 261120  }
   0x9   : > { %s1205_s24 = smov (%p36_p4, %s1203_s24), 0  ;;  %259 = sbr.rel (%p256_p3) target bundleno = 928 (0x3a0), region = 40 }
   0xa   : > { %s1045_s10 = smov (!%p256_p3), 64   ;;  %v365_v58 = vld [vmem:[%s1193_s3] sm:$0xff] (!%p256_p3)  ;;  %v370_v60 = vld [vmem:[%s1194_s4 + $0x8] sm:$0xff] (!%p256_p3) }
  0x10   : > { %s1207_s19 = smov (!%p318_p5, %s1031_s19), 1  ;;  %s1209_s18 = smov (!%p320_p6, %s1027_s18), 1 }
  0x11   : > { %s870_s25 = sshll.u32 %s1207_s19, 3  ;;  %s869_s26 = sshll.u32 %s1209_s18, 2 }
  0x12   : > { %s1106_s27 = sadd.s32 %s870_s25, %s869_s26 }
  0x13   : > { %s871_s28 = sshll.u32 %s1106_s27, 3  ;;  %s877_s8 = sshll.u32 %s1106_s27, 2 }
  0x14   : > { %s339_s6 = scalar_lea.vmem %s1191_s1, %s871_s28  ;;  %s329_s9 = scalar_lea.vmem %s1190_s0, %s871_s28 }
  0x15   : > { %v438_v0 = vld [vmem:[%s339_s6] sm:$0xff]  ;;  %v439_v1 = vld [vmem:[%s339_s6 + $0x8] sm:$0xff]  ;;  %v1112_v2 = vld [vmem:[%s339_s6 + $0x10] sm:$0xff]  ;;  %s348_s11 = scalar_lea.vmem %s1192_s2, %s877_s8  ;;  %s361_s14 = scalar_lea.vmem %s1195_s5, %s877_s8 }
  0x16   : > { %v442_v3 = vmul.f32 %v438_v0, %v438_v0  ;;  %v444_v4 = vmul.f32 %v1112_v2, %v1112_v2  ;;  %v1119_v5 = vld [vmem:[%s339_s6 + $0x18] sm:$0xff]  ;;  %v443_v6 = vmul.f32 %v439_v1, %v439_v1  ;;  %v383_v8 = vld [vmem:[%s329_s9] sm:$0xff]  ;;  %v1123_v9 = vld [vmem:[%s329_s9 + $0x8] sm:$0xff] }
  0x17   : > { %v445_v7 = vmul.f32 %v1119_v5, %v1119_v5  ;;  %v387_v10 = vmul.f32 %v383_v8, %v383_v8  ;;  %v388_v11 = vmul.f32 %v1123_v9, %v1123_v9  ;;  %v385_v12 = vld [vmem:[%s329_s9 + $0x10] sm:$0xff]  ;;  %v386_v13 = vld [vmem:[%s329_s9 + $0x18] sm:$0xff] }
  0x18   : > { %446 = vadd.xlane.f32.xlu0 %v442_v3  ;;  %450 = vadd.xlane.f32.xlu1 %v444_v4  ;;  %v389_v14 = vmul.f32 %v385_v12, %v385_v12  ;;  %v390_v15 = vmul.f32 %v386_v13, %v386_v13  ;;  %v371_v4 = vld [vmem:[%s1194_s4 + $0x10] sm:$0xff] }
  0x1c   : > { %448 = vadd.xlane.f32.xlu0 %v443_v6  ;;  %452 = vadd.xlane.f32.xlu1 %v445_v7  ;;  %v367_v7 = vld [vmem:[%s1193_s3 + $0x10] sm:$0xff] }
  0x20   : > { %391 = vadd.xlane.f32.xlu0 %v387_v10  ;;  %393 = vadd.xlane.f32.xlu1 %v388_v11  ;;  %v372_v10 = vld [vmem:[%s1194_s4 + $0x18] sm:$0xff] }
  0x24   : > { %395 = vadd.xlane.f32.xlu0 %v389_v14  ;;  %397 = vadd.xlane.f32.xlu1 %v390_v15 }
  0xa5   : > { %v447_v16 = vpop.xlane.xlu0 %446  ;;  %v451_v17 = vpop.xlane.xlu1 %450 }
  0xa6   : > { %v454_v18 = vmul.f32 0.0078125, %v447_v16  ;;  %v456_v19 = vmul.f32 0.0078125, %v451_v17 }
  0xa8   : > { %v458_v20 = vadd.f32 1.1920929e-07, %v454_v18  ;;  %v460_v22 = vadd.f32 1.1920929e-07, %v456_v19 }
  0xa9   : > { %v449_v21 = vpop.xlane.xlu0 %448  ;;  %v453_v23 = vpop.xlane.xlu1 %452 }
  0xaa   : > { %973 = vrsqrt.f32 %v458_v20  ;;  %v455_v24 = vmul.f32 0.0078125, %v449_v21  ;;  %v457_v25 = vmul.f32 0.0078125, %v453_v23 }
  0xab   : > { %975 = vrsqrt.f32 %v460_v22 }
  0xac   : > { %v459_v26 = vadd.f32 1.1920929e-07, %v455_v24  ;;  %v461_v28 = vadd.f32 1.1920929e-07, %v457_v25 }
  0xad   : > { %v392_v27 = vpop.xlane.xlu0 %391  ;;  %v394_v29 = vpop.xlane.xlu1 %393 }
  0xae   : > { %977 = vrsqrt.f32 %v459_v26  ;;  %v400_v30 = vmul.f32 0.0078125, %v392_v27  ;;  %v401_v31 = vmul.f32 0.0078125, %v394_v29 }
  0xaf   : > { %979 = vrsqrt.f32 %v461_v28 }
  0xb0   : > { %v404_v32 = vadd.f32 1.1920929e-07, %v400_v30  ;;  %v405_v34 = vadd.f32 1.1920929e-07, %v401_v31 }
  0xb1   : > { %v396_v33 = vpop.xlane.xlu0 %395  ;;  %v398_v35 = vpop.xlane.xlu1 %397 }
  0xb2   : > { %981 = vrsqrt.f32 %v404_v32  ;;  %v402_v36 = vmul.f32 0.0078125, %v396_v33  ;;  %v403_v37 = vmul.f32 0.0078125, %v398_v35 }
  0xb3   : > { %983 = vrsqrt.f32 %v405_v34 }
  0xb4   : > { %v974_v38 = vpop.eup %973  ;;  %v406_v39 = vadd.f32 1.1920929e-07, %v402_v36  ;;  %v407_v41 = vadd.f32 1.1920929e-07, %v403_v37  ;;  %v545_v36 = vlaneseq }
  0xb5   : > { %v466_v40 = vmul.f32 %v974_v38, %v438_v0  ;;  %v976_v42 = vpop.eup %975 }
  0xb6   : > { %985 = vrsqrt.f32 %v406_v39  ;;  %v468_v46 = vmul.f32 %v976_v42, %v1112_v2  ;;  %v546_v37 = vshrl.u32 %v545_v36, 7  ;;  %v556_v38 = vand.u32 127, %v545_v36 }
  0xb7   : > { %470 = vrot.lane.b32.xlu0 %v466_v40, %s1045_s10  ;;  %987 = vrsqrt.f32 %v407_v41  ;;  %v478_v63 = vmul.f32 %v466_v40, %v365_v58 }
  0xb8   : > { %v978_v43 = vpop.eup %977  ;;  %v547_v39 = vadd.s32 8, %v546_v37  ;;  %v548_v40 = vadd.s32 16, %v546_v37  ;;  %vm557_vm0 = vcmp.ge.s32.totalorder %v546_v37, %v556_v38 }
  0xb9   : > { %v467_v44 = vmul.f32 %v978_v43, %v439_v1  ;;  %v980_v45 = vpop.eup %979 }
  0xba   : > { %v469_v50 = vmul.f32 %v980_v45, %v1119_v5  ;;  %vm558_vm2 = vcmp.ge.s32.totalorder %v547_v39, %v556_v38  ;;  %vm559_vm3 = vcmp.ge.s32.totalorder %v548_v40, %v556_v38 }
  0xbb   : > { %472 = vrot.lane.b32.xlu1 %v467_v44, %s1045_s10  ;;  %v479_v0 = vmul.f32 %v467_v44, %v366_v59 }
  0xbc   : > { %v982_v47 = vpop.eup %981 }
  0xbd   : > { %v412_v48 = vmul.f32 %v982_v47, %v383_v8  ;;  %v984_v49 = vpop.eup %983  ;;  %v549_v47 = vadd.s32 24, %v546_v37 }
  0xbe   : > { %v413_v53 = vmul.f32 %v984_v49, %v1123_v9  ;;  %v368_v9 = vld [vmem:[%s1193_s3 + $0x18] sm:$0xff] }
  0xbf   : > { %474 = vrot.lane.b32.xlu1 %v468_v46, %s1045_s10  ;;  %416 = vrot.lane.b32.xlu0 %v412_v48, %s1045_s10  ;;  %v481_v14 = vmul.f32 %v469_v50, %v368_v9  ;;  %v424_v23 = vmul.f32 %v412_v48, %v365_v58  ;;  %vm560_vm4 = vcmp.ge.s32.totalorder %v549_v47, %v556_v38  ;;  %v971_v58 = vld [vmem:[%s348_s11] sm:$0xff]  }
  0xc0   : > { %v986_v51 = vpop.eup %985  ;;  %v425_v24 = vmul.f32 %v413_v53, %v366_v59  ;;  %922 = vmatprep.subr.bf16.mxu1 %v971_v58  ;;  %v972_v59 = vld [vmem:[%s348_s11 + $0x8] sm:$0xff]  }
  0xc1   : > { %v414_v52 = vmul.f32 %v986_v51, %v385_v12  ;;  %v988_v54 = vpop.eup %987  ;;  %923 = vmatpush3.bf16.msra.mxu1 %v971_v58 }
  0xc2   : > { %v415_v55 = vmul.f32 %v988_v54, %v386_v13  ;;  %v480_v13 = vmul.f32 %v468_v46, %v367_v7  ;;  %924 = vmatprep.subr.bf16.mxu1 %v972_v59 }
  0xc3   : > { %476 = vrot.lane.b32.xlu1 %v469_v50, %s1045_s10  ;;  %420 = vrot.lane.b32.xlu0 %v414_v52, %s1045_s10  ;;  %v426_v29 = vmul.f32 %v414_v52, %v367_v7 }
  0xc4   : > { %v427_v30 = vmul.f32 %v415_v55, %v368_v9 }
  0xc5   : > { %925 = vmatpush3.bf16.msra.mxu1 %v972_v59 }
  0xc7   : > { %418 = vrot.lane.b32.xlu1 %v413_v53, %s1045_s10 }
  0xcb   : > { %422 = vrot.lane.b32.xlu1 %v415_v55, %s1045_s10 }
 0x129   : > { %v471_v57 = vpop.permute.xlu0 %470 }
 0x12a   : > { %v482_v61 = vmul.f32 %v471_v57, %v369_v56 }
 0x12c   : > { %v486_v2 = vadd.f32 %v482_v61, %v478_v63 }
 0x12d   : > { %v473_v62 = vpop.permute.xlu1 %472 }
 0x12e   : > { %v483_v1 = vmul.f32 %v473_v62, %v370_v60 }
 0x130   : > { %v487_v3 = vadd.f32 %v483_v1, %v479_v0 }
 0x131   : > { %v475_v5 = vpop.permute.xlu1 %474  ;;  %v417_v8 = vpop.permute.xlu0 %416 }
 0x132   : > { %v490_v6 = vpack.c.bf16 %v487_v3, %v486_v2  ;;  %v484_v11 = vmul.f32 %v475_v5, %v371_v4  ;;  %v428_v17 = vmul.f32 %v417_v8, %v369_v56 }
 0x134   : > { %914 = vmatprep.subr.bf16.mxu0 %v490_v6  ;;  %v488_v16 = vadd.f32 %v484_v11, %v480_v13  ;;  %v432_v26 = vadd.f32 %v428_v17, %v424_v23 }
 0x135   : > { %v477_v12 = vpop.permute.xlu1 %476  ;;  %915 = vmatpush3.bf16.xpose.msra.mxu0 %v490_v6  ;;  %v421_v19 = vpop.permute.xlu0 %420 }
 0x136   : > { %v485_v15 = vmul.f32 %v477_v12, %v372_v10  ;;  %v430_v25 = vmul.f32 %v421_v19, %v371_v4 }
 0x138   : > { %v489_v18 = vadd.f32 %v485_v15, %v481_v14  ;;  %v434_v33 = vadd.f32 %v430_v25, %v426_v29 }
 0x139   : > { %v419_v20 = vpop.permute.xlu1 %418 }
 0x13a   : > { %v429_v21 = vmul.f32 %v419_v20, %v370_v60  ;;  %v491_v22 = vpack.c.bf16 %v489_v18, %v488_v16 }
 0x13c   : > { %916 = vmatprep.subr.bf16.mxu0 %v491_v22  ;;  %v433_v27 = vadd.f32 %v429_v21, %v425_v24 }
 0x13d   : > { %v423_v28 = vpop.permute.xlu1 %422  ;;  %917 = vmatpush3.bf16.xpose.msra.mxu0 %v491_v22 }
 0x13e   : > { %v431_v31 = vmul.f32 %v423_v28, %v372_v10  ;;  %v436_v32 = vpack.c.bf16 %v433_v27, %v432_v26 }
 0x140   : > { %v435_v34 = vadd.f32 %v431_v31, %v427_v30  ;;  %918 = vmatprep.mubr.bf16.mxu0 %v436_v32 }
 0x142   : > { %v437_v35 = vpack.c.bf16 %v435_v34, %v434_v33 }
 0x144   : > { %919 = vmatmul.mubr.bf16.vlgmr.msra.gmra.mrb[0].mxu0 %v437_v35 }
 0x217   : > { %v920_v41 = vpop.f32.mrb[0].mxu0 }
 0x218   : > { %v526_v42 = vpop.f32.mrb[1].mxu0  ;;  %v543_v43 = vmul.f32 0.088388346, %v920_v41 }
 0x219   : > { %v541_v44 = vmul.f32 0.088388346, %v526_v42  ;;  %v921_v45 = vpop.f32.mrb[2].mxu0 }
 0x21a   : > { %v529_v46 = vpop.f32.mrb[3].mxu0  ;;  %v544_v51 = vmul.f32 0.088388346, %v921_v45  ;;  %v563_v53 = vsel %vm559_vm3, %v543_v43, -1e+30 }
 0x21b   : > { %v542_v48 = vmul.f32 0.088388346, %v529_v46  ;;  %v561_v49 = vsel %vm557_vm0, %v541_v44, -1e+30  ;;  %v572_v55 = vsel %vm565_vm1, %v563_v53, -inf }
 0x21c   : > { %v566_v50 = vsel %vm565_vm1, %v561_v49, -inf  ;;  %v564_v56 = vsel %vm560_vm4, %v544_v51, -1e+30 }
 0x21d   : > { %567 = vmax.xlane.f32.xlu0 %v566_v50  ;;  %v562_v52 = vsel %vm558_vm2, %v542_v48, -1e+30  ;;  %v575_v57 = vsel %vm565_vm1, %v564_v56, -inf }
 0x21e   : > { %v569_v54 = vsel %vm565_vm1, %v562_v52, -inf }
 0x21f   : > { %570 = vmax.xlane.f32.xlu1 %v569_v54 }
 0x221   : > { %573 = vmax.xlane.f32.xlu0 %v572_v55 }
 0x225   : > { %576 = vmax.xlane.f32.xlu0 %v575_v57 }
 0x2aa   : > { %v568_v60 = vpop.xlane.xlu0 %567 }
 0x2ab   : > { %v578_v61 = vsub.f32 %v561_v49, %v568_v60 }
 0x2ac   : > { %v571_v62 = vpop.xlane.xlu1 %570 }
 0x2ad   : > { %v582_v63 = vmul.f32 1.442695, %v578_v61  ;;  %v579_v0 = vsub.f32 %v562_v52, %v571_v62 }
 0x2ae   : > { %v574_v1 = vpop.xlane.xlu0 %573 }
 0x2af   : > { %989 = vpow2.f32 %v582_v63  ;;  %v584_v2 = vmul.f32 1.442695, %v579_v0  ;;  %v580_v3 = vsub.f32 %v563_v53, %v574_v1 }
 0x2b1   : > { %991 = vpow2.f32 %v584_v2  ;;  %v586_v4 = vmul.f32 1.442695, %v580_v3 }
 0x2b2   : > { %v577_v5 = vpop.xlane.xlu0 %576 }
 0x2b3   : > { %993 = vpow2.f32 %v586_v4  ;;  %v581_v6 = vsub.f32 %v564_v56, %v577_v5 }
 0x2b5   : > { %v588_v7 = vmul.f32 1.442695, %v581_v6 }
 0x2b7   : > { %995 = vpow2.f32 %v588_v7 }
 0x2b9   : > { %v990_v8 = vpop.eup %989 }
 0x2ba   : > { %v590_v9 = vsel %vm565_vm1, %v990_v8, 0.0 }
 0x2bb   : > { %v992_v10 = vpop.eup %991  ;;  %591 = vadd.xlane.f32.xlu0 %v590_v9 }
 0x2bc   : > { %v593_v11 = vsel %vm565_vm1, %v992_v10, 0.0  ;;  %v602_v12 = vpack.c.bf16 %v992_v10, %v990_v8 }
 0x2bd   : > { %v994_v13 = vpop.eup %993  ;;  %594 = vadd.xlane.f32.xlu1 %v593_v11 }
 0x2be   : > { %926 = vmatprep.mubr.msk.bf16.mxu1 %vm565_vm1, %v602_v12  ;;  %v596_v14 = vsel %vm565_vm1, %v994_v13, 0.0 }
 0x2bf   : > { %597 = vadd.xlane.f32.xlu0 %v596_v14 }
 0x2c1   : > { %v996_v15 = vpop.eup %995 }
 0x2c2   : > { %v599_v16 = vsel %vm565_vm1, %v996_v15, 0.0  ;;  %v603_v17 = vpack.c.bf16 %v996_v15, %v994_v13 }
 0x2c3   : > { %600 = vadd.xlane.f32.xlu1 %v599_v16 }
 0x2c4   : > { %927 = vmatmul.mubr.msk.bf16.vlgmr.msra.gmra.mrb[0].mxu1 %vm565_vm1, %v603_v17 }
 0x348   : > { %v592_v18 = vpop.xlane.xlu0 %591 }
 0x349   : > { %997 = vrcp.f32 %v592_v18 }
 0x34a   : > { %v595_v19 = vpop.xlane.xlu1 %594 }
 0x34c   : > { %v598_v20 = vpop.xlane.xlu0 %597 }
 0x34d   : > { %999 = vrcp.f32 %v598_v20 }
 0x350   : > { %v601_v21 = vpop.xlane.xlu1 %600 }
 0x351   : > { %1001 = vrcp.f32 %v601_v21 }
 0x352   : > { %1003 = vrcp.f32 %v595_v19 }
 0x353   : > { %v998_v22 = vpop.eup %997 }
 0x357   : > { %v1000_v24 = vpop.eup %999 }
 0x35b   : > { %v1002_v26 = vpop.eup %1001 }
 0x35c   : > { %v1004_v28 = vpop.eup %1003 }
 0x397   : > { %v928_v23 = vpop.f32.mrb[0].mxu1 }
 0x398   : > { %v660_v25 = vpop.f32.mrb[1].mxu1  ;;  %v681_v29 = vmul.f32 %v1000_v24, %v928_v23 }
 0x399   : > { %v929_v27 = vpop.f32.mrb[2].mxu1  ;;  %v679_v32 = vmul.f32 %v998_v22, %v660_v25 }
 0x39a   : > { %v682_v30 = vmul.f32 %v1002_v26, %v929_v27  ;;  %v663_v31 = vpop.f32.mrb[3].mxu1 }
 0x39b   : > { %v680_v33 = vmul.f32 %v1004_v28, %v663_v31 }
 0x39c   : > { %v903_v34 = vpack.c.bf16 %v682_v30, %v681_v29 }
 0x39d   : > { %v898_v35 = vpack.c.bf16 %v680_v33, %v679_v32 }
 0x39e   : > { %905 = vst [vmem:[%s361_s14 + $0x8] sm:$0xff] %v903_v34  }
 0x39f   : > { %899 = vst [vmem:[%s361_s14] sm:$0xff] %v898_v35  }
 0x3a0 PF: > { %s15_s22 = sadd.s32 1, %s1043_s22   ;;  %s1196_s18 = smov %s1035_s20 }
 0x3a1   : > { %p12_p7 = scmp.ge.s32.totalorder %s15_s22, 6   ;;  %s1197_s19 = smov %s1039_s21 }
 0x3a2   : > { %s1198_s20 = smov %s1201_s23  ;;  %s1199_s21 = smov %s1205_s24 }
 0x3a3   :  { %14 = sbr.rel (!%p12_p7) target bundleno = 3 (0x3), region = 78 }

</bundles_post_ra>
